<compile_context>
chip_gen: v7x
topology: tpu7x:2x2x1
jax: 0.10.0
libtpu: 0.0.40
codegen_flags: <defaults>
</compile_context>

<pallas_src>
import functools

import jax
import jax.numpy as jnp
from jax.experimental import pallas as pl
from jax.experimental.pallas import tpu as pltpu

NEG_SLOPE = 0.01          # F.leaky_relu default
BN_EPS = 1e-5
C1, C2, C3 = 64, 128, 256
LANES = 128


def _round_up(x, m):
    return (x + m - 1) // m * m


def _leaky(x):
    # identical to leaky_relu for 0 < slope < 1; one mul + one max (VPU).
    return jnp.maximum(x, NEG_SLOPE * x)


# ----------------------------------------------------------------------------
# Fused kernel: conv1/bn1 -> conv2/bn2 -> conv3/bn3 -> partial max over the
# tile, accumulated (max) over the N-tile grid axis into a resident block.
# ----------------------------------------------------------------------------
def pointnet_global_feature(x, params, *, tile_n=None, n_split=2,
                            epilogue_dtype=jnp.float32):
    """x: (B, Cin, N) channels-first f32 (native Conv1d layout) -> (B, 256)."""
    B, Cin, N = x.shape
    (w1, s1), (w2, s2), (w3, s3) = params['conv1'], params['conv2'], params['conv3']

    # ---- tiling of the point axis ------------------------------------------
    if tile_n is None:
        tile_n = min(2048, _round_up(N, LANES))      # big tiles: few grid steps
    tile_n = max(LANES, _round_up(tile_n, LANES))
    n_blocks = pl.cdiv(N, tile_n)                    # real tiles along N
    n_split = max(1, min(n_split, n_blocks))         # per-core partials (v7x)
    tps = pl.cdiv(n_blocks, n_split)                 # tiles per split
    covered = n_split * tps                          # tiles actually iterated
    needs_mask = (covered * tile_n) != N             # ragged / over-covered tail
    n_chunks = tile_n // LANES
    ep = epilogue_dtype

    def kernel(x_ref, w1_ref, s1_ref, w2_ref, s2_ref, w3_ref, s3_ref, out_ref):
        n = pl.program_id(2)

        def layer(h_bf16, w_ref, s_ref):
            # BN scale already folded into w; epilogue is shift + leaky only.
            h = jnp.dot(w_ref[...], h_bf16, preferred_element_type=jnp.float32)
            h = h.astype(ep) + s_ref[...].astype(ep)
            return _leaky(h)

        h = layer(x_ref[0].astype(jnp.bfloat16), w1_ref, s1_ref)    # (64,  TN)
        h = layer(h.astype(jnp.bfloat16), w2_ref, s2_ref)           # (128, TN)
        h = layer(h.astype(jnp.bfloat16), w3_ref, s3_ref)           # (256, TN)

        # per-lane-position partial max over the tile: pure VPU maxima over
        # vreg-aligned 128-lane chunks (no XLU cross-lane reduce).
        if needs_mask:
            nt = pl.program_id(1) * tps + n          # logical (unclamped) tile
            col = nt * tile_n + jax.lax.broadcasted_iota(jnp.int32, (C3, LANES), 1)
            neg = jnp.array(-jnp.inf, dtype=ep)

        def chunk(j):
            c = h[:, j * LANES:(j + 1) * LANES]
            if needs_mask:
                c = jnp.where(col + j * LANES < N, c, neg)
            return c

        pm = chunk(0)
        for j in range(1, n_chunks):
            pm = jnp.maximum(pm, chunk(j))
        pm = pm.astype(jnp.float32)                  # running max kept in f32

        @pl.when(n == 0)
        def _():
            out_ref[0, 0] = pm

        @pl.when(n > 0)
        def _():
            out_ref[0, 0] = jnp.maximum(out_ref[0, 0], pm)

    def x_map(b, s, n):
        idx = s * tps + n
        if covered > n_blocks:
            # tiles past the end are clamped onto the last real tile; their
            # contribution is fully masked to -inf inside the kernel.
            idx = jnp.minimum(idx, n_blocks - 1)
        return (b, 0, idx)

    def w_map(b, s, n):
        return (0, 0)

    # rough per-step VMEM footprint; only raise the scoped limit for huge tiles.
    est_bytes = tile_n * (2 * 8 * 4                  # x tile (8-sublane padded) x2 bufs
                          + (C1 + C2 + C3) * 4       # f32 activations
                          + (C1 + C2) * 2)           # bf16 copies feeding the MXU
    cp_kwargs = dict(dimension_semantics=("parallel", "parallel", "arbitrary"))
    if est_bytes > 12 * (1 << 20):
        cp_kwargs["vmem_limit_bytes"] = int(min(2 * est_bytes, 64 * (1 << 20)))

    out = pl.pallas_call(
        kernel,
        out_shape=jax.ShapeDtypeStruct((B, n_split, C3, LANES), jnp.float32),
        grid_spec=pltpu.PrefetchScalarGridSpec(
            num_scalar_prefetch=0,
            grid=(B, n_split, tps),
            in_specs=[
                pl.BlockSpec((1, Cin, tile_n), x_map),
                pl.BlockSpec(w1.shape, w_map), pl.BlockSpec(s1.shape, w_map),
                pl.BlockSpec(w2.shape, w_map), pl.BlockSpec(s2.shape, w_map),
                pl.BlockSpec(w3.shape, w_map), pl.BlockSpec(s3.shape, w_map),
            ],
            out_specs=pl.BlockSpec((1, 1, C3, LANES), lambda b, s, n: (b, s, 0, 0)),
        ),
        compiler_params=pltpu.CompilerParams(**cp_kwargs),
    )(x, w1, s1, w2, s2, w3, s3)

    # tiny residual reduction: combine per-split partials and the 128 lane slots.
    return jnp.max(out, axis=(1, 3))                 # (B, 256)


# ----------------------------------------------------------------------------
# Full forward (matches pointnet_encoder.forward)
# ----------------------------------------------------------------------------
def pointnet_encoder_forward(params, x, *, tile_n=None, n_split=2,
                             epilogue_dtype=jnp.float32):
    B, C, N = x.shape
    g = pointnet_global_feature(x, params, tile_n=tile_n, n_split=n_split,
                                epilogue_dtype=epilogue_dtype)          # (B, 256)
    # x.view(-1,256,1).repeat(1,1,N) == broadcast along N.  Materialized only to
    # match the reference module's output shape; downstream consumers should use
    # pointnet_global_feature() and fuse the repeat to avoid the HBM write.
    return jnp.broadcast_to(g[:, :, None], (B, C3, N))


# ----------------------------------------------------------------------------
# Parameters: conv bias + BN(eval) folded into per-channel scale/shift; the
# scale is folded straight into the bf16 weights (per output channel row).
# ----------------------------------------------------------------------------
def init_conv_bn(key, cin, cout):
    k1, k2, k3, k4, k5, k6 = jax.random.split(key, 6)
    w = jax.random.normal(k1, (cout, cin), jnp.float32) / jnp.sqrt(float(cin))
    b = 0.1 * jax.random.normal(k2, (cout,), jnp.float32)
    gamma = 1.0 + 0.1 * jax.random.normal(k3, (cout,), jnp.float32)
    beta = 0.1 * jax.random.normal(k4, (cout,), jnp.float32)
    mean = 0.1 * jax.random.normal(k5, (cout,), jnp.float32)
    var = 1.0 + 0.1 * jax.random.uniform(k6, (cout,), jnp.float32)
    scale = gamma / jnp.sqrt(var + BN_EPS)
    w_folded = (w * scale[:, None]).astype(jnp.bfloat16)        # (cout, cin)
    shift = ((b - mean) * scale + beta)[:, None]                # (cout, 1) f32
    return w_folded, shift


def init_params(key, channel=3):
    k1, k2, k3 = jax.random.split(key, 3)
    return {
        'conv1': init_conv_bn(k1, channel, C1),
        'conv2': init_conv_bn(k2, C1, C2),
        'conv3': init_conv_bn(k3, C2, C3),
    }


# ----------------------------------------------------------------------------
# Pure-JAX reference (same folded params / bf16 matmul numerics).
# ----------------------------------------------------------------------------
def reference_forward(params, x):
    B, C, N = x.shape
    h = x
    for name in ('conv1', 'conv2', 'conv3'):
        w, shift = params[name]
        h = jnp.einsum('oc,bcn->bon', w, h.astype(jnp.bfloat16),
                       preferred_element_type=jnp.float32)
        h = _leaky(h + shift[None])
    g = jnp.max(h, axis=2)                                      # (B, 256)
    return jnp.broadcast_to(g[:, :, None], (B, C3, N))


if __name__ == "__main__":
    key = jax.random.PRNGKey(0)
    kx, kp = jax.random.split(key)
    B, C, N = 2, 3, 512
    params = init_params(kp, channel=C)
    x = jax.random.normal(kx, (B, C, N), jnp.float32)

    # main run (single large tile per batch, f32 epilogue)
    out = jax.block_until_ready(jax.jit(pointnet_encoder_forward)(params, x))
    assert out.shape == (B, C3, N) and out.dtype == jnp.float32
    assert bool(jnp.all(jnp.isfinite(out)))
    ref = jax.block_until_ready(jax.jit(reference_forward)(params, x))
    assert bool(jnp.allclose(out, ref, rtol=1e-3, atol=1e-3))

    # ragged N + multi-tile accumulation + 2-way split of the point axis
    x2 = jax.random.normal(jax.random.PRNGKey(1), (B, C, 600), jnp.float32)
    out2 = jax.block_until_ready(
        jax.jit(functools.partial(pointnet_encoder_forward,
                                  tile_n=256, n_split=2))(params, x2))
    ref2 = jax.block_until_ready(jax.jit(reference_forward)(params, x2))
    assert out2.shape == (B, C3, 600)
    assert bool(jnp.allclose(out2, ref2, rtol=1e-3, atol=1e-3))

    # bf16 epilogue variant (v6e/v7x VALU saver); looser tolerance
    out3 = jax.block_until_ready(
        jax.jit(functools.partial(pointnet_encoder_forward,
                                  epilogue_dtype=jnp.bfloat16))(params, x))
    assert out3.shape == (B, C3, N) and bool(jnp.all(jnp.isfinite(out3)))
    assert bool(jnp.allclose(out3, ref, rtol=1e-1, atol=1e-1))

    print("KERNEL_OK")
</pallas_src>

<mosaic_0001>
module attributes {stable_mosaic.version = 11 : i64} {
  func.func @kernel(%arg0: i32, %arg1: i32, %arg2: i32, %arg3: memref<1x3x512xf32, #tpu.memory_space<vmem>>, %arg4: memref<64x3xbf16, #tpu.memory_space<vmem>>, %arg5: memref<64x1xf32, #tpu.memory_space<vmem>>, %arg6: memref<128x64xbf16, #tpu.memory_space<vmem>>, %arg7: memref<128x1xf32, #tpu.memory_space<vmem>>, %arg8: memref<256x128xbf16, #tpu.memory_space<vmem>>, %arg9: memref<256x1xf32, #tpu.memory_space<vmem>>, %arg10: memref<1x1x256x128xf32, #tpu.memory_space<vmem>>) attributes {dimension_semantics = [#tpu.dimension_semantics<parallel>, #tpu.dimension_semantics<parallel>, #tpu.dimension_semantics<arbitrary>], iteration_bounds = array<i64: 2, 1, 1>, scalar_prefetch = 0 : i64, scratch_operands = 0 : i64, tpu.core_type = #tpu.core_type<tc>, window_params = [{transform_indices = @transform_0, window_bounds = array<i64: 1, 3, 512>}, {pipeline_mode = #tpu.pipeline_mode<synchronous>, transform_indices = @transform_1, window_bounds = array<i64: 64, 3>}, {pipeline_mode = #tpu.pipeline_mode<synchronous>, transform_indices = @transform_2, window_bounds = array<i64: 64, 1>}, {pipeline_mode = #tpu.pipeline_mode<synchronous>, transform_indices = @transform_3, window_bounds = array<i64: 128, 64>}, {pipeline_mode = #tpu.pipeline_mode<synchronous>, transform_indices = @transform_4, window_bounds = array<i64: 128, 1>}, {pipeline_mode = #tpu.pipeline_mode<synchronous>, transform_indices = @transform_5, window_bounds = array<i64: 256, 128>}, {pipeline_mode = #tpu.pipeline_mode<synchronous>, transform_indices = @transform_6, window_bounds = array<i64: 256, 1>}, {transform_indices = @transform_7, window_bounds = array<i64: 1, 1, 256, 128>}]} {
    %c0 = arith.constant 0 : index
    %c0_0 = arith.constant 0 : index
    %c0_1 = arith.constant 0 : index
    %0 = vector.load %arg3[%c0, %c0_0, %c0_1] : memref<1x3x512xf32, #tpu.memory_space<vmem>>, vector<1x3x512xf32>
    %1 = vector.shape_cast %0 : vector<1x3x512xf32> to vector<3x512xf32>
    %2 = arith.truncf %1 : vector<3x512xf32> to vector<3x512xbf16>
    %c0_2 = arith.constant 0 : index
    %c0_3 = arith.constant 0 : index
    %3 = vector.load %arg4[%c0_2, %c0_3] : memref<64x3xbf16, #tpu.memory_space<vmem>>, vector<64x3xbf16>
    %cst = arith.constant dense<0.000000e+00> : vector<64x512xf32>
    %4 = tpu.matmul %3, %2, %cst {dimension_numbers = #tpu.dot_dimension_numbers<[1], [0], [0], [1], [0, 0, 1, 1], [], []>} : vector<64x3xbf16>, vector<3x512xbf16>, vector<64x512xf32> -> vector<64x512xf32>
    %c0_4 = arith.constant 0 : index
    %c0_5 = arith.constant 0 : index
    %5 = vector.load %arg5[%c0_4, %c0_5] : memref<64x1xf32, #tpu.memory_space<vmem>>, vector<64x1xf32>
    %6 = vector.broadcast %5 : vector<64x1xf32> to vector<64x512xf32>
    %7 = arith.addf %4, %6 : vector<64x512xf32>
    %cst_6 = arith.constant 0.00999999977 : f32
    %8 = vector.broadcast %cst_6 : f32 to vector<64x512xf32>
    %9 = arith.mulf %8, %7 : vector<64x512xf32>
    %10 = arith.maximumf %7, %9 : vector<64x512xf32>
    %11 = arith.truncf %10 : vector<64x512xf32> to vector<64x512xbf16>
    %c0_7 = arith.constant 0 : index
    %c0_8 = arith.constant 0 : index
    %12 = vector.load %arg6[%c0_7, %c0_8] : memref<128x64xbf16, #tpu.memory_space<vmem>>, vector<128x64xbf16>
    %cst_9 = arith.constant dense<0.000000e+00> : vector<128x512xf32>
    %13 = tpu.matmul %12, %11, %cst_9 {dimension_numbers = #tpu.dot_dimension_numbers<[1], [0], [0], [1], [0, 0, 1, 1], [], []>} : vector<128x64xbf16>, vector<64x512xbf16>, vector<128x512xf32> -> vector<128x512xf32>
    %c0_10 = arith.constant 0 : index
    %c0_11 = arith.constant 0 : index
    %14 = vector.load %arg7[%c0_10, %c0_11] : memref<128x1xf32, #tpu.memory_space<vmem>>, vector<128x1xf32>
    %15 = vector.broadcast %14 : vector<128x1xf32> to vector<128x512xf32>
    %16 = arith.addf %13, %15 : vector<128x512xf32>
    %cst_12 = arith.constant 0.00999999977 : f32
    %17 = vector.broadcast %cst_12 : f32 to vector<128x512xf32>
    %18 = arith.mulf %17, %16 : vector<128x512xf32>
    %19 = arith.maximumf %16, %18 : vector<128x512xf32>
    %20 = arith.truncf %19 : vector<128x512xf32> to vector<128x512xbf16>
    %c0_13 = arith.constant 0 : index
    %c0_14 = arith.constant 0 : index
    %21 = vector.load %arg8[%c0_13, %c0_14] : memref<256x128xbf16, #tpu.memory_space<vmem>>, vector<256x128xbf16>
    %cst_15 = arith.constant dense<0.000000e+00> : vector<256x512xf32>
    %22 = tpu.matmul %21, %20, %cst_15 {dimension_numbers = #tpu.dot_dimension_numbers<[1], [0], [0], [1], [0, 0, 1, 1], [], []>} : vector<256x128xbf16>, vector<128x512xbf16>, vector<256x512xf32> -> vector<256x512xf32>
    %c0_16 = arith.constant 0 : index
    %c0_17 = arith.constant 0 : index
    %23 = vector.load %arg9[%c0_16, %c0_17] : memref<256x1xf32, #tpu.memory_space<vmem>>, vector<256x1xf32>
    %24 = vector.broadcast %23 : vector<256x1xf32> to vector<256x512xf32>
    %25 = arith.addf %22, %24 : vector<256x512xf32>
    %cst_18 = arith.constant 0.00999999977 : f32
    %26 = vector.broadcast %cst_18 : f32 to vector<256x512xf32>
    %27 = arith.mulf %26, %25 : vector<256x512xf32>
    %28 = arith.maximumf %25, %27 : vector<256x512xf32>
    %29 = vector.extract_strided_slice %28 {offsets = [0, 0], sizes = [256, 128], strides = [1, 1]} : vector<256x512xf32> to vector<256x128xf32>
    %30 = vector.extract_strided_slice %28 {offsets = [0, 128], sizes = [256, 128], strides = [1, 1]} : vector<256x512xf32> to vector<256x128xf32>
    %31 = arith.maximumf %29, %30 : vector<256x128xf32>
    %32 = vector.extract_strided_slice %28 {offsets = [0, 256], sizes = [256, 128], strides = [1, 1]} : vector<256x512xf32> to vector<256x128xf32>
    %33 = arith.maximumf %31, %32 : vector<256x128xf32>
    %34 = vector.extract_strided_slice %28 {offsets = [0, 384], sizes = [256, 128], strides = [1, 1]} : vector<256x512xf32> to vector<256x128xf32>
    %35 = arith.maximumf %33, %34 : vector<256x128xf32>
    %c0_i32 = arith.constant 0 : i32
    %36 = arith.cmpi eq, %arg2, %c0_i32 : i32
    %37 = arith.extui %36 : i1 to i32
    %c0_i32_19 = arith.constant 0 : i32
    %38 = arith.cmpi ne, %37, %c0_i32_19 : i32
    scf.if %38 {
      %c0_22 = arith.constant 0 : index
      %c0_23 = arith.constant 0 : index
      %c0_24 = arith.constant 0 : index
      %c0_25 = arith.constant 0 : index
      %42 = vector.load %arg10[%c0_22, %c0_23, %c0_24, %c0_25] : memref<1x1x256x128xf32, #tpu.memory_space<vmem>>, vector<1x1x256x128xf32>
      %43 = vector.shape_cast %42 : vector<1x1x256x128xf32> to vector<256x128xf32>
      %44 = vector.shape_cast %35 : vector<256x128xf32> to vector<1x1x256x128xf32>
      tpu.vector_store %arg10[%c0_22, %c0_23, %c0_24, %c0_25], %44 {strides = array<i32>} : memref<1x1x256x128xf32, #tpu.memory_space<vmem>>, vector<1x1x256x128xf32>,
    } else {
    }
    %c0_i32_20 = arith.constant 0 : i32
    %39 = arith.cmpi sgt, %arg2, %c0_i32_20 : i32
    %40 = arith.extui %39 : i1 to i32
    %c0_i32_21 = arith.constant 0 : i32
    %41 = arith.cmpi ne, %40, %c0_i32_21 : i32
    scf.if %41 {
      %c0_22 = arith.constant 0 : index
      %c0_23 = arith.constant 0 : index
      %c0_24 = arith.constant 0 : index
      %c0_25 = arith.constant 0 : index
      %42 = vector.load %arg10[%c0_22, %c0_23, %c0_24, %c0_25] : memref<1x1x256x128xf32, #tpu.memory_space<vmem>>, vector<1x1x256x128xf32>
      %43 = vector.shape_cast %42 : vector<1x1x256x128xf32> to vector<256x128xf32>
      %44 = arith.maximumf %43, %35 : vector<256x128xf32>
      %c0_26 = arith.constant 0 : index
      %c0_27 = arith.constant 0 : index
      %c0_28 = arith.constant 0 : index
      %c0_29 = arith.constant 0 : index
      %45 = vector.load %arg10[%c0_26, %c0_27, %c0_28, %c0_29] : memref<1x1x256x128xf32, #tpu.memory_space<vmem>>, vector<1x1x256x128xf32>
      %46 = vector.shape_cast %45 : vector<1x1x256x128xf32> to vector<256x128xf32>
      %47 = vector.shape_cast %44 : vector<256x128xf32> to vector<1x1x256x128xf32>
      tpu.vector_store %arg10[%c0_26, %c0_27, %c0_28, %c0_29], %47 {strides = array<i32>} : memref<1x1x256x128xf32, #tpu.memory_space<vmem>>, vector<1x1x256x128xf32>,
    } else {
    }
    return
  }
  func.func @transform_0(%arg0: i32, %arg1: i32, %arg2: i32) -> (i32, i32, i32) {
    %c1_i32 = arith.constant 1 : i32
    %0 = arith.muli %arg1, %c1_i32 : i32
    %1 = arith.addi %0, %arg2 : i32
    %c0_i32 = arith.constant 0 : i32
    %c0_i32_0 = arith.constant 0 : i32
    return %arg0, %c0_i32, %1 : i32, i32, i32
  }
  func.func @transform_1(%arg0: i32, %arg1: i32, %arg2: i32) -> (i32, i32) {
    %c0_i32 = arith.constant 0 : i32
    %c0_i32_0 = arith.constant 0 : i32
    %c0_i32_1 = arith.constant 0 : i32
    return %c0_i32, %c0_i32_0 : i32, i32
  }
  func.func @transform_2(%arg0: i32, %arg1: i32, %arg2: i32) -> (i32, i32) {
    %c0_i32 = arith.constant 0 : i32
    %c0_i32_0 = arith.constant 0 : i32
    %c0_i32_1 = arith.constant 0 : i32
    return %c0_i32, %c0_i32_0 : i32, i32
  }
  func.func @transform_3(%arg0: i32, %arg1: i32, %arg2: i32) -> (i32, i32) {
    %c0_i32 = arith.constant 0 : i32
    %c0_i32_0 = arith.constant 0 : i32
    %c0_i32_1 = arith.constant 0 : i32
    return %c0_i32, %c0_i32_0 : i32, i32
  }
  func.func @transform_4(%arg0: i32, %arg1: i32, %arg2: i32) -> (i32, i32) {
    %c0_i32 = arith.constant 0 : i32
    %c0_i32_0 = arith.constant 0 : i32
    %c0_i32_1 = arith.constant 0 : i32
    return %c0_i32, %c0_i32_0 : i32, i32
  }
  func.func @transform_5(%arg0: i32, %arg1: i32, %arg2: i32) -> (i32, i32) {
    %c0_i32 = arith.constant 0 : i32
    %c0_i32_0 = arith.constant 0 : i32
    %c0_i32_1 = arith.constant 0 : i32
    return %c0_i32, %c0_i32_0 : i32, i32
  }
  func.func @transform_6(%arg0: i32, %arg1: i32, %arg2: i32) -> (i32, i32) {
    %c0_i32 = arith.constant 0 : i32
    %c0_i32_0 = arith.constant 0 : i32
    %c0_i32_1 = arith.constant 0 : i32
    return %c0_i32, %c0_i32_0 : i32, i32
  }
  func.func @transform_7(%arg0: i32, %arg1: i32, %arg2: i32) -> (i32, i32, i32, i32) {
    %c0_i32 = arith.constant 0 : i32
    %c0_i32_0 = arith.constant 0 : i32
    %c0_i32_1 = arith.constant 0 : i32
    return %arg0, %arg1, %c0_i32, %c0_i32_0 : i32, i32, i32, i32
  }
}

</mosaic_0001>

<bundles_post_ra>
// kernel: pointnet_encoder_forward.1
= control target key start
LH: loop header
LB: loop body
LE: loop exit
PB: predicated region body
PF: predicated region fallthrough
CT: control target
= control target key end

     0   :  { %s2713_s24 = smov 0   ;;  %s2715_s25 = smov 0   ;;  %s3118_s0 = inlined_call_operand.vmem [shape: f32[2,3,512], index: 0, kind: input, shape index: {}]   ;;  %s3119_s1 = inlined_call_operand.vmem [shape: bf16[64,3], index: 1, kind: input, shape index: {}]   ;;  %s3120_s2 = inlined_call_operand.vmem [shape: f32[64,1], index: 2, kind: input, shape index: {}]   ;;  %s3121_s3 = inlined_call_operand.vmem [shape: bf16[128,64], index: 3, kind: input, shape index: {}]   ;;  %s3122_s4 = inlined_call_operand.vmem [shape: f32[128,1], index: 4, kind: input, shape index: {}]   ;;  %s3123_s5 = inlined_call_operand.vmem [shape: bf16[256,128], index: 5, kind: input, shape index: {}]   ;;  %s3124_s6 = inlined_call_operand.vmem [shape: f32[256,1], index: 6, kind: input, shape index: {}]   ;;  %s3125_s7 = inlined_call_operand.vmem [shape: f32[2,1,256,128], index: 7, kind: output, shape index: {}]  }
   0x1   :  { %s2717_s26 = smov 0  }
   0x2 LB: > { %s36_s27 = sadd.s32 1, %s2665_s25  ;;  %p2528_p0 = scmp.ge.s32.totalorder %s2669_s26, 1  ;;  %s2669_s26 = sphi %s2717_s26, %s17_s26   ;;  %s2665_s25 = sphi %s2715_s25, %s3127_s25   ;;  %s2661_s24 = sphi %s2713_s24, %s3126_s24  }
   0x3   : > { %p38_p1 = scmp.ge.s32.totalorder %s36_s27, 2  ;;  %p269_p2 = scmp.lt.s32.totalorder %s2669_s26, 3 }
   0x5   : > { %s3129_s27 = smov (%p38_p1, %s36_s27), 0  ;;  %p270_p3 = pnand %p2528_p0, %p269_p2 }
   0x6   : > { %v354_v0 = vld [vmem:[%s3120_s2 + $0x10] sm:$0xff] (!%p270_p3)  ;;  %v352_v1 = vld [vmem:[%s3120_s2] sm:$0xff] (!%p270_p3)  ;;  %p312_p4 = scmp.lt.s32.totalorder (!%p270_p3), %s2661_s24, 1  ;;  %v2671_v2 = vmov (!%p270_p3), 0   ;;  %vm433_vm0 = vcmask (!%p270_p3), 1040384   ;;  %v355_v3 = vld [vmem:[%s3120_s2 + $0x18] sm:$0xff] (!%p270_p3) }
   0x7   : > { %273 = sbr.rel (%p270_p3) target bundleno = 911 (0x38f), region = 48  ;;  %2616 = vset.pattern.permute.xlu1 (!%p270_p3), %v2671_v2  ;;  %2615 = vset.pattern.permute.xlu0 (!%p270_p3), %v2671_v2  ;;  %v353_v4 = vld [vmem:[%s3120_s2 + $0x8] sm:$0xff] (!%p270_p3)  ;;  %vm434_vm1 = vcmask (!%p270_p3), 1041408   ;;  %v2672_v5 = vmov (!%p270_p3), 65535   ;;  %v356_v10 = vld [vmem:[%s3120_s2 + $0x20] sm:$0xff] (!%p270_p3)  ;;  %v359_v20 = vld [vmem:[%s3120_s2 + $0x38] sm:$0xff] (!%p270_p3) }
   0x8   : > { %372 = vperm.xlu1 (!%p270_p3), %2616, %v354_v0   ;;  %362 = vperm.xlu0 (!%p270_p3), %2615, %v352_v1   ;;  %v435_v6 = vsel (!%p270_p3), %vm433_vm0, 4294967295, %v2672_v5  ;;  %v357_v9 = vld [vmem:[%s3120_s2 + $0x28] sm:$0xff] (!%p270_p3)  ;;  %v358_v21 = vld [vmem:[%s3120_s2 + $0x30] sm:$0xff] (!%p270_p3)  ;;  %v2619_v24 = vld [vmem:[%s3119_s1] sm:$0xff] (!%p270_p3)   ;;  %vm420_vm2 = vcmask (!%p270_p3), 23552   ;;  %vm827_vm3 = vcmask (!%p270_p3), 523264  }
   0x9   : > { %481 = vmatprep.mubr.bf16.mxu0 (!%p270_p3), %v2671_v2  ;;  %554 = vmatprep.mubr.bf16.mxu1 (!%p270_p3), %v2671_v2  ;;  %v436_v15 = vsel (!%p270_p3), %vm434_vm1, %v435_v6, 0  ;;  %v692_v25 = vld [vmem:[%s3122_s4 + $0x8] sm:$0xff] (!%p270_p3)  ;;  %v691_v26 = vld [vmem:[%s3122_s4] sm:$0xff] (!%p270_p3)  ;;  %v694_v27 = vld [vmem:[%s3122_s4 + $0x18] sm:$0xff] (!%p270_p3) }
   0xa   : > { %v693_v28 = vld [vmem:[%s3122_s4 + $0x10] sm:$0xff] (!%p270_p3)  ;;  %v2620_v29 = vld [vmem:[%s3119_s1 + $0x8] sm:$0xff] (!%p270_p3)   ;;  %v695_v31 = vld [vmem:[%s3122_s4 + $0x20] sm:$0xff] (!%p270_p3) }
   0xb   : > { %v696_v30 = vld [vmem:[%s3122_s4 + $0x28] sm:$0xff] (!%p270_p3)  ;;  %v698_v32 = vld [vmem:[%s3122_s4 + $0x38] sm:$0xff] (!%p270_p3)  ;;  %v697_v33 = vld [vmem:[%s3122_s4 + $0x30] sm:$0xff] (!%p270_p3) }
   0xc   : > { %377 = vperm.xlu1 (!%p270_p3), %2616, %v355_v3   ;;  %367 = vperm.xlu0 (!%p270_p3), %2615, %v353_v4   ;;  %v2621_v34 = vld [vmem:[%s3119_s1 + $0x10] sm:$0xff] (!%p270_p3)   ;;  %v700_v35 = vld [vmem:[%s3122_s4 + $0x48] sm:$0xff] (!%p270_p3)  ;;  %v699_v36 = vld [vmem:[%s3122_s4 + $0x40] sm:$0xff] (!%p270_p3) }
   0xd   : > { %v702_v37 = vld [vmem:[%s3122_s4 + $0x58] sm:$0xff] (!%p270_p3)  ;;  %v701_v38 = vld [vmem:[%s3122_s4 + $0x50] sm:$0xff] (!%p270_p3)  ;;  %v704_v40 = vld [vmem:[%s3122_s4 + $0x68] sm:$0xff] (!%p270_p3) }
   0xe   : > { %s3131_s24 = smov (!%p312_p4, %s2661_s24), 1  ;;  %v2622_v39 = vld [vmem:[%s3119_s1 + $0x18] sm:$0xff]   ;;  %v703_v41 = vld [vmem:[%s3122_s4 + $0x60] sm:$0xff]  ;;  %v705_v43 = vld [vmem:[%s3122_s4 + $0x70] sm:$0xff] }
   0xf   : > { %s2587_s13 = sshll.u32 %s3131_s24, 4  ;;  %v706_v42 = vld [vmem:[%s3122_s4 + $0x78] sm:$0xff]  ;;  %v1271_v44 = vld [vmem:[%s3124_s6 + $0x8] sm:$0xff]  ;;  %v1270_v45 = vld [vmem:[%s3124_s6] sm:$0xff]  ;;  %s2588_s29 = sshll.u32 %s3131_s24, 8 }
  0x10   : > { %s319_s16 = scalar_lea.vmem %s3118_s0, %s2587_s13  ;;  %387 = vperm.xlu1 %2616, %v357_v9   ;;  %382 = vperm.xlu0 %2615, %v356_v10   ;;  %v1273_v46 = vld [vmem:[%s3124_s6 + $0x18] sm:$0xff]  ;;  %v1272_v47 = vld [vmem:[%s3124_s6 + $0x10] sm:$0xff]  ;;  %v1275_v48 = vld [vmem:[%s3124_s6 + $0x28] sm:$0xff]  ;;  %s3075_s9 = scalar_lea.vmem %s3125_s7, %s2588_s29 }
  0x11   : > { %v332_v7 = vld [vmem:[%s319_s16] sm:$0x77]  ;;  %v333_v8 = vld [vmem:[%s319_s16 + $0x8] sm:$0x77]  ;;  %v1277_v50 = vld [vmem:[%s3124_s6 + $0x38] sm:$0xff] }
  0x12   : > { %v336_v11 = vcombine.high %v332_v7, %v332_v7  ;;  %v337_v12 = vcombine.high %v333_v8, %v333_v8  ;;  %v340_v13 = vpack.c.bf16 %v332_v7, %v332_v7  ;;  %v342_v14 = vpack.c.bf16 %v333_v8, %v333_v8  ;;  %v1274_v49 = vld [vmem:[%s3124_s6 + $0x20] sm:$0xff]  ;;  %v1276_v51 = vld [vmem:[%s3124_s6 + $0x30] sm:$0xff]  ;;  %v1279_v52 = vld [vmem:[%s3124_s6 + $0x48] sm:$0xff] }
  0x13   : > { %v1278_v53 = vld [vmem:[%s3124_s6 + $0x40] sm:$0xff]  ;;  %v1281_v54 = vld [vmem:[%s3124_s6 + $0x58] sm:$0xff]  ;;  %v1280_v55 = vld [vmem:[%s3124_s6 + $0x50] sm:$0xff] }
  0x14   : > { %v341_v16 = vpack.c.bf16 %v336_v11, %v336_v11  ;;  %v343_v17 = vpack.c.bf16 %v337_v12, %v337_v12  ;;  %v438_v22 = vand.u32 %v436_v15, %v340_v13  ;;  %v444_v23 = vand.u32 %v436_v15, %v342_v14  ;;  %397 = vperm.xlu1 %2616, %v359_v20   ;;  %v1283_v56 = vld [vmem:[%s3124_s6 + $0x68] sm:$0xff]  ;;  %v1282_v57 = vld [vmem:[%s3124_s6 + $0x60] sm:$0xff]  ;;  %v1285_v58 = vld [vmem:[%s3124_s6 + $0x78] sm:$0xff] }
  0x15   : > { %392 = vperm.xlu0 %2615, %v358_v21   ;;  %v1284_v59 = vld [vmem:[%s3124_s6 + $0x70] sm:$0xff]  ;;  %v1287_v60 = vld [vmem:[%s3124_s6 + $0x88] sm:$0xff]  ;;  %v1286_v61 = vld [vmem:[%s3124_s6 + $0x80] sm:$0xff] }
  0x16   : > { %v441_v18 = vand.u32 %v436_v15, %v341_v16  ;;  %v447_v19 = vand.u32 %v436_v15, %v343_v17  ;;  %v1289_v62 = vld [vmem:[%s3124_s6 + $0x98] sm:$0xff]  ;;  %v1288_v63 = vld [vmem:[%s3124_s6 + $0x90] sm:$0xff]  ;;  %v1291_v0 = vld [vmem:[%s3124_s6 + $0xa8] sm:$0xff] }
  0x17   : > { %v1290_v1 = vld [vmem:[%s3124_s6 + $0xa0] sm:$0xff]  ;;  %v1293_v3 = vld [vmem:[%s3124_s6 + $0xb8] sm:$0xff]  ;;  %v1292_v4 = vld [vmem:[%s3124_s6 + $0xb0] sm:$0xff] }
  0x18   : > { %449 = vmatprep.subr.bf16.mxu0 %v441_v18  ;;  %522 = vmatprep.subr.bf16.mxu1 %v447_v19  ;;  %v1295_v5 = vld [vmem:[%s3124_s6 + $0xc8] sm:$0xff]  ;;  %v1294_v6 = vld [vmem:[%s3124_s6 + $0xc0] sm:$0xff]  ;;  %v1297_v7 = vld [vmem:[%s3124_s6 + $0xd8] sm:$0xff] }
  0x19   : > { %450 = vmatpush1.bf16.msra.mxu0 %v438_v22  ;;  %523 = vmatpush1.bf16.msra.mxu1 %v444_v23  ;;  %v1296_v8 = vld [vmem:[%s3124_s6 + $0xd0] sm:$0xff]  ;;  %v1299_v9 = vld [vmem:[%s3124_s6 + $0xe8] sm:$0xff]  ;;  %v1298_v10 = vld [vmem:[%s3124_s6 + $0xe0] sm:$0xff] }
  0x1a   : > { %714 = vperm.xlu1 %2616, %v692_v25   ;;  %709 = vperm.xlu0 %2615, %v691_v26   ;;  %v1301_v11 = vld [vmem:[%s3124_s6 + $0xf8] sm:$0xff]  ;;  %v1300_v12 = vld [vmem:[%s3124_s6 + $0xf0] sm:$0xff] }
  0x1c   : > { %2537 = vmatmul.mubr.msk.bf16.vlgmr.msra.gmra.mrb[0].mxu0 %vm420_vm2, %v2619_v24  ;;  %2541 = vmatmul.mubr.msk.bf16.vlgmr.msra.gmra.mrb[0].mxu1 %vm420_vm2, %v2619_v24 }
  0x1d   : > { %491 = vmatprep.mubr.bf16.mxu0 %v2671_v2  ;;  %564 = vmatprep.mubr.bf16.mxu1 %v2671_v2 }
  0x1e   : > { %724 = vperm.xlu1 %2616, %v694_v27   ;;  %719 = vperm.xlu0 %2615, %v693_v28  }
  0x22   : > { %734 = vperm.xlu1 %2616, %v696_v30   ;;  %729 = vperm.xlu0 %2615, %v695_v31  }
  0x24   : > { %2538 = vmatmul.mubr.msk.bf16.gmra.mrb[4].mxu0 %vm420_vm2, %v2620_v29  ;;  %2542 = vmatmul.mubr.msk.bf16.gmra.mrb[4].mxu1 %vm420_vm2, %v2620_v29 }
  0x25   : > { %501 = vmatprep.mubr.bf16.mxu0 %v2671_v2  ;;  %574 = vmatprep.mubr.bf16.mxu1 %v2671_v2 }
  0x26   : > { %744 = vperm.xlu1 %2616, %v698_v32   ;;  %739 = vperm.xlu0 %2615, %v697_v33  }
  0x2a   : > { %754 = vperm.xlu1 %2616, %v700_v35   ;;  %749 = vperm.xlu0 %2615, %v699_v36  }
  0x2c   : > { %2539 = vmatmul.mubr.msk.bf16.gmra.mrb[8].mxu0 %vm420_vm2, %v2621_v34  ;;  %2543 = vmatmul.mubr.msk.bf16.gmra.mrb[8].mxu1 %vm420_vm2, %v2621_v34 }
  0x2d   : > { %511 = vmatprep.mubr.bf16.mxu0 %v2671_v2  ;;  %584 = vmatprep.mubr.bf16.mxu1 %v2671_v2 }
  0x2e   : > { %764 = vperm.xlu1 %2616, %v702_v37   ;;  %759 = vperm.xlu0 %2615, %v701_v38  }
  0x32   : > { %774 = vperm.xlu1 %2616, %v704_v40   ;;  %769 = vperm.xlu0 %2615, %v703_v41  }
  0x34   : > { %2540 = vmatmul.mubr.msk.bf16.gmra.mrb[12].mxu0 %vm420_vm2, %v2622_v39  ;;  %2544 = vmatmul.mubr.msk.bf16.gmra.mrb[12].mxu1 %vm420_vm2, %v2622_v39 }
  0x35   : > { %884 = vmatprep.mubr.bf16.mxu0 %v2671_v2  ;;  %997 = vmatprep.mubr.bf16.mxu1 %v2671_v2 }
  0x36   : > { %784 = vperm.xlu1 %2616, %v706_v42   ;;  %779 = vperm.xlu0 %2615, %v705_v43  }
  0x3a   : > { %1309 = vperm.xlu1 %2616, %v1271_v44   ;;  %1304 = vperm.xlu0 %2615, %v1270_v45  }
  0x3e   : > { %1319 = vperm.xlu1 %2616, %v1273_v46   ;;  %1314 = vperm.xlu0 %2615, %v1272_v47  }
  0x42   : > { %1329 = vperm.xlu1 %2616, %v1275_v48   ;;  %1324 = vperm.xlu0 %2615, %v1274_v49  }
  0x46   : > { %1339 = vperm.xlu1 %2616, %v1277_v50   ;;  %1334 = vperm.xlu0 %2615, %v1276_v51  }
  0x4a   : > { %1349 = vperm.xlu1 %2616, %v1279_v52   ;;  %1344 = vperm.xlu0 %2615, %v1278_v53  }
  0x4e   : > { %1359 = vperm.xlu1 %2616, %v1281_v54   ;;  %1354 = vperm.xlu0 %2615, %v1280_v55  }
  0x52   : > { %1369 = vperm.xlu1 %2616, %v1283_v56   ;;  %1364 = vperm.xlu0 %2615, %v1282_v57  }
  0x56   : > { %1379 = vperm.xlu1 %2616, %v1285_v58   ;;  %1374 = vperm.xlu0 %2615, %v1284_v59  }
  0x5a   : > { %1389 = vperm.xlu1 %2616, %v1287_v60   ;;  %1384 = vperm.xlu0 %2615, %v1286_v61  }
  0x5e   : > { %1399 = vperm.xlu1 %2616, %v1289_v62   ;;  %1394 = vperm.xlu0 %2615, %v1288_v63  }
  0x62   : > { %1409 = vperm.xlu1 %2616, %v1291_v0   ;;  %1404 = vperm.xlu0 %2615, %v1290_v1  }
  0x66   : > { %1419 = vperm.xlu1 %2616, %v1293_v3   ;;  %1414 = vperm.xlu0 %2615, %v1292_v4  }
  0x6a   : > { %1429 = vperm.xlu1 %2616, %v1295_v5   ;;  %1424 = vperm.xlu0 %2615, %v1294_v6  }
  0x6e   : > { %1439 = vperm.xlu1 %2616, %v1297_v7   ;;  %1434 = vperm.xlu0 %2615, %v1296_v8  }
  0x72   : > { %1449 = vperm.xlu1 %2616, %v1299_v9   ;;  %1444 = vperm.xlu0 %2615, %v1298_v10  }
  0x76   : > { %1459 = vperm.xlu1 %2616, %v1301_v11   ;;  %1454 = vperm.xlu0 %2615, %v1300_v12  }
  0x87   : > { %v363_v13 = vpop.permute.xlu0 %362  ;;  %v373_v16 = vpop.permute.xlu1 %372 }
  0x8b   : > { %v368_v17 = vpop.permute.xlu0 %367  ;;  %v378_v46 = vpop.permute.xlu1 %377 }
  0x8f   : > { %v388_v12 = vpop.permute.xlu1 %387 }
  0xef   : > { %v483_v14 = vpop.f32.mrb[0].mxu0  ;;  %v556_v15 = vpop.f32.mrb[0].mxu1 }
  0xf0   : > { %v484_v18 = vadd.f32 %v483_v14, %v363_v13  ;;  %v557_v19 = vadd.f32 %v556_v15, %v363_v13  ;;  %v485_v20 = vpop.f32.mrb[1].mxu0  ;;  %v558_v21 = vpop.f32.mrb[1].mxu1 }
  0xf1   : > { %v486_v24 = vadd.f32 %v485_v20, %v363_v13  ;;  %v559_v25 = vadd.f32 %v558_v21, %v363_v13  ;;  %v487_v26 = vpop.f32.mrb[2].mxu0  ;;  %v560_v27 = vpop.f32.mrb[2].mxu1 }
  0xf2   : > { %v595_v22 = vmul.f32 0.01, %v484_v18  ;;  %v597_v23 = vmul.f32 0.01, %v557_v19  ;;  %v488_v28 = vadd.f32 %v487_v26, %v368_v17  ;;  %v561_v29 = vadd.f32 %v560_v27, %v368_v17  ;;  %v489_v30 = vpop.f32.mrb[3].mxu0  ;;  %v562_v31 = vpop.f32.mrb[3].mxu1 }
  0xf3   : > { %v596_v33 = vmul.f32 0.01, %v486_v24  ;;  %v598_v34 = vmul.f32 0.01, %v559_v25  ;;  %v490_v37 = vadd.f32 %v489_v30, %v368_v17  ;;  %v563_v38 = vadd.f32 %v562_v31, %v368_v17  ;;  %v383_v13 = vpop.permute.xlu0 %382 }
  0xf4   : > { %v629_v32 = vmax.f32 %v557_v19, %v597_v23  ;;  %v599_v35 = vmul.f32 0.01, %v488_v28  ;;  %v601_v36 = vmul.f32 0.01, %v561_v29  ;;  %v627_v39 = vmax.f32 %v484_v18, %v595_v22 }
  0xf5   : > { %v600_v42 = vmul.f32 0.01, %v490_v37  ;;  %v602_v43 = vmul.f32 0.01, %v563_v38  ;;  %v628_v47 = vmax.f32 %v486_v24, %v596_v33  ;;  %v630_v48 = vmax.f32 %v559_v25, %v598_v34 }
  0xf6   : > { %v631_v40 = vmax.f32 %v488_v28, %v599_v35  ;;  %v633_v41 = vmax.f32 %v561_v29, %v601_v36 }
  0xf7   : > { %v493_v44 = vpop.f32.mrb[4].mxu0  ;;  %v566_v45 = vpop.f32.mrb[4].mxu1  ;;  %v632_v53 = vmax.f32 %v490_v37, %v600_v42  ;;  %v634_v54 = vmax.f32 %v563_v38, %v602_v43 }
  0xf8   : > { %v494_v49 = vadd.f32 %v493_v44, %v373_v16  ;;  %v567_v50 = vadd.f32 %v566_v45, %v373_v16  ;;  %v659_v51 = vpack.c.bf16 %v631_v40, %v627_v39  ;;  %v661_v52 = vpack.c.bf16 %v633_v41, %v629_v32  ;;  %v495_v55 = vpop.f32.mrb[5].mxu0  ;;  %v568_v56 = vpop.f32.mrb[5].mxu1 }
  0xf9   : > { %v496_v59 = vadd.f32 %v495_v55, %v373_v16  ;;  %v497_v60 = vpop.f32.mrb[6].mxu0  ;;  %v570_v61 = vpop.f32.mrb[6].mxu1  ;;  %v660_v3 = vpack.c.bf16 %v632_v53, %v628_v47  ;;  %v662_v4 = vpack.c.bf16 %v634_v54, %v630_v48  ;;  %v569_v7 = vadd.f32 %v568_v56, %v373_v16 }
  0xfa   : > { %v603_v57 = vmul.f32 0.01, %v494_v49  ;;  %v605_v58 = vmul.f32 0.01, %v567_v50  ;;  %v498_v62 = vadd.f32 %v497_v60, %v378_v46  ;;  %v571_v63 = vadd.f32 %v570_v61, %v378_v46  ;;  %v499_v0 = vpop.f32.mrb[7].mxu0  ;;  %v572_v1 = vpop.f32.mrb[7].mxu1 }
  0xfb   : > { %v604_v6 = vmul.f32 0.01, %v496_v59  ;;  %v500_v10 = vadd.f32 %v499_v0, %v378_v46  ;;  %v573_v11 = vadd.f32 %v572_v1, %v378_v46  ;;  %852 = vmatprep.subr.bf16.mxu0 %v660_v3  ;;  %965 = vmatprep.subr.bf16.mxu1 %v662_v4  ;;  %v606_v22 = vmul.f32 0.01, %v569_v7  ;;  %v398_v48 = vpop.permute.xlu1 %397 }
  0xfc   : > { %v637_v5 = vmax.f32 %v567_v50, %v605_v58  ;;  %v607_v8 = vmul.f32 0.01, %v498_v62  ;;  %v609_v9 = vmul.f32 0.01, %v571_v63  ;;  %v635_v14 = vmax.f32 %v494_v49, %v603_v57  ;;  %853 = vmatpush1.bf16.msra.mxu0 %v659_v51  ;;  %966 = vmatpush1.bf16.msra.mxu1 %v661_v52  ;;  %v393_v49 = vpop.permute.xlu0 %392 }
  0xfd   : > { %v608_v18 = vmul.f32 0.01, %v500_v10  ;;  %v610_v19 = vmul.f32 0.01, %v573_v11  ;;  %v636_v26 = vmax.f32 %v496_v59, %v604_v6  ;;  %v638_v42 = vmax.f32 %v569_v7, %v606_v22 }
  0xfe   : > { %v639_v15 = vmax.f32 %v498_v62, %v607_v8  ;;  %v641_v17 = vmax.f32 %v571_v63, %v609_v9 }
  0xff   : > { %v503_v20 = vpop.f32.mrb[8].mxu0  ;;  %v576_v21 = vpop.f32.mrb[8].mxu1  ;;  %v640_v29 = vmax.f32 %v500_v10, %v608_v18  ;;  %v642_v32 = vmax.f32 %v573_v11, %v610_v19 }
 0x100   : > { %v504_v23 = vadd.f32 %v503_v20, %v383_v13  ;;  %v577_v16 = vadd.f32 %v576_v21, %v383_v13  ;;  %v505_v24 = vpop.f32.mrb[9].mxu0  ;;  %v578_v25 = vpop.f32.mrb[9].mxu1  ;;  %v663_v27 = vpack.c.bf16 %v639_v15, %v635_v14  ;;  %v665_v28 = vpack.c.bf16 %v641_v17, %v637_v5 }
 0x101   : > { %v507_v30 = vpop.f32.mrb[10].mxu0  ;;  %v580_v31 = vpop.f32.mrb[10].mxu1  ;;  %v506_v35 = vadd.f32 %v505_v24, %v383_v13  ;;  %v579_v43 = vadd.f32 %v578_v25, %v383_v13  ;;  %v664_v47 = vpack.c.bf16 %v640_v29, %v636_v26  ;;  %v666_v53 = vpack.c.bf16 %v642_v32, %v638_v42  ;;  %v2626_v42 = vld [vmem:[%s3121_s3 + $0x18] sm:$0xff]  }
 0x102   : > { %v611_v33 = vmul.f32 0.01, %v504_v23  ;;  %v613_v34 = vmul.f32 0.01, %v577_v16  ;;  %v509_v36 = vpop.f32.mrb[11].mxu0  ;;  %v582_v37 = vpop.f32.mrb[11].mxu1  ;;  %v508_v38 = vadd.f32 %v507_v30, %v388_v12  ;;  %v581_v39 = vadd.f32 %v580_v31, %v388_v12 }
 0x103   : > { %v510_v40 = vadd.f32 %v509_v36, %v388_v12  ;;  %v583_v41 = vadd.f32 %v582_v37, %v388_v12  ;;  %v612_v54 = vmul.f32 0.01, %v506_v35  ;;  %854 = vmatprep.subr.bf16.mxu0 %v664_v47  ;;  %v614_v60 = vmul.f32 0.01, %v579_v43  ;;  %967 = vmatprep.subr.bf16.mxu1 %v666_v53  ;;  %v715_v47 = vpop.permute.xlu1 %714 }
 0x104   : > { %v615_v44 = vmul.f32 0.01, %v508_v38  ;;  %v617_v45 = vmul.f32 0.01, %v581_v39  ;;  %v643_v50 = vmax.f32 %v504_v23, %v611_v33  ;;  %v645_v51 = vmax.f32 %v577_v16, %v613_v34  ;;  %855 = vmatpush1.bf16.msra.mxu0 %v663_v27  ;;  %968 = vmatpush1.bf16.msra.mxu1 %v665_v28 }
 0x105   : > { %v616_v46 = vmul.f32 0.01, %v510_v40  ;;  %v618_v52 = vmul.f32 0.01, %v583_v41  ;;  %v644_v20 = vmax.f32 %v506_v35, %v612_v54  ;;  %v646_v21 = vmax.f32 %v579_v43, %v614_v60  ;;  %v2627_v43 = vld [vmem:[%s3121_s3 + $0x20] sm:$0xff]  }
 0x106   : > { %v647_v55 = vmax.f32 %v508_v38, %v615_v44  ;;  %v649_v56 = vmax.f32 %v581_v39, %v617_v45  ;;  %v2623_v39 = vld [vmem:[%s3121_s3] sm:$0xff]   ;;  %v2628_v44 = vld [vmem:[%s3121_s3 + $0x28] sm:$0xff]   ;;  %v2629_v45 = vld [vmem:[%s3121_s3 + $0x30] sm:$0xff]  }
 0x107   : > { %v648_v57 = vmax.f32 %v510_v40, %v616_v46  ;;  %v513_v58 = vpop.f32.mrb[12].mxu0  ;;  %v586_v59 = vpop.f32.mrb[12].mxu1  ;;  %v650_v61 = vmax.f32 %v583_v41, %v618_v52  ;;  %v2624_v40 = vld [vmem:[%s3121_s3 + $0x8] sm:$0xff]   ;;  %v2625_v41 = vld [vmem:[%s3121_s3 + $0x10] sm:$0xff]   ;;  %v2630_v46 = vld [vmem:[%s3121_s3 + $0x38] sm:$0xff]  }
 0x108   : > { %v514_v62 = vadd.f32 %v513_v58, %v393_v49  ;;  %v587_v63 = vadd.f32 %v586_v59, %v393_v49  ;;  %v515_v0 = vpop.f32.mrb[13].mxu0  ;;  %v588_v1 = vpop.f32.mrb[13].mxu1  ;;  %v667_v3 = vpack.c.bf16 %v647_v55, %v643_v50  ;;  %v669_v4 = vpack.c.bf16 %v649_v56, %v645_v51 }
 0x109   : > { %v516_v5 = vadd.f32 %v515_v0, %v393_v49  ;;  %v589_v6 = vadd.f32 %v588_v1, %v393_v49  ;;  %v517_v7 = vpop.f32.mrb[14].mxu0  ;;  %v590_v8 = vpop.f32.mrb[14].mxu1  ;;  %v668_v29 = vpack.c.bf16 %v648_v57, %v644_v20  ;;  %v670_v30 = vpack.c.bf16 %v650_v61, %v646_v21 }
 0x10a   : > { %v619_v9 = vmul.f32 0.01, %v514_v62  ;;  %v621_v10 = vmul.f32 0.01, %v587_v63  ;;  %v518_v11 = vadd.f32 %v517_v7, %v398_v48  ;;  %v591_v12 = vadd.f32 %v590_v8, %v398_v48  ;;  %v519_v13 = vpop.f32.mrb[15].mxu0  ;;  %v592_v14 = vpop.f32.mrb[15].mxu1 }
 0x10b   : > { %v620_v15 = vmul.f32 0.01, %v516_v5  ;;  %v622_v17 = vmul.f32 0.01, %v589_v6  ;;  %v520_v18 = vadd.f32 %v519_v13, %v398_v48  ;;  %v593_v19 = vadd.f32 %v592_v14, %v398_v48  ;;  %856 = vmatprep.subr.bf16.mxu0 %v668_v29  ;;  %969 = vmatprep.subr.bf16.mxu1 %v670_v30  ;;  %v710_v48 = vpop.permute.xlu0 %709 }
 0x10c   : > { %v623_v22 = vmul.f32 0.01, %v518_v11  ;;  %v625_v23 = vmul.f32 0.01, %v591_v12  ;;  %v651_v16 = vmax.f32 %v514_v62, %v619_v9  ;;  %v653_v24 = vmax.f32 %v587_v63, %v621_v10  ;;  %857 = vmatpush1.bf16.msra.mxu0 %v667_v3  ;;  %970 = vmatpush1.bf16.msra.mxu1 %v669_v4  ;;  %v725_v10 = vpop.permute.xlu1 %724 }
 0x10d   : > { %v624_v25 = vmul.f32 0.01, %v520_v18  ;;  %v626_v26 = vmul.f32 0.01, %v593_v19  ;;  %v652_v31 = vmax.f32 %v516_v5, %v620_v15  ;;  %v654_v32 = vmax.f32 %v589_v6, %v622_v17 }
 0x10e   : > { %v655_v27 = vmax.f32 %v518_v11, %v623_v22  ;;  %v657_v28 = vmax.f32 %v591_v12, %v625_v23 }
 0x10f   : > { %v656_v33 = vmax.f32 %v520_v18, %v624_v25  ;;  %v658_v34 = vmax.f32 %v593_v19, %v626_v26  ;;  %v720_v11 = vpop.permute.xlu0 %719 }
 0x110   : > { %v671_v36 = vpack.c.bf16 %v655_v27, %v651_v16  ;;  %v673_v37 = vpack.c.bf16 %v657_v28, %v653_v24 }
 0x111   : > { %v672_v35 = vpack.c.bf16 %v656_v33, %v652_v31  ;;  %v674_v38 = vpack.c.bf16 %v658_v34, %v654_v32 }
 0x113   : > { %858 = vmatprep.subr.bf16.mxu0 %v672_v35  ;;  %971 = vmatprep.subr.bf16.mxu1 %v674_v38 }
 0x114   : > { %859 = vmatpush1.bf16.msra.mxu0 %v671_v36  ;;  %972 = vmatpush1.bf16.msra.mxu1 %v673_v37 }
 0x117   : > { %2553 = vmatmul.mubr.msk.bf16.vlgmr.msra.gmra.mrb[16].mxu0 %vm827_vm3, %v2623_v39  ;;  %2561 = vmatmul.mubr.msk.bf16.vlgmr.msra.gmra.mrb[16].mxu1 %vm827_vm3, %v2623_v39 }
 0x118   : > { %894 = vmatprep.mubr.bf16.mxu0 %v2671_v2  ;;  %1007 = vmatprep.mubr.bf16.mxu1 %v2671_v2 }
 0x11f   : > { %2554 = vmatmul.mubr.msk.bf16.gmra.mrb[20].mxu0 %vm827_vm3, %v2624_v40  ;;  %2562 = vmatmul.mubr.msk.bf16.gmra.mrb[20].mxu1 %vm827_vm3, %v2624_v40 }
 0x120   : > { %904 = vmatprep.mubr.bf16.mxu0 %v2671_v2  ;;  %1017 = vmatprep.mubr.bf16.mxu1 %v2671_v2 }
 0x127   : > { %2555 = vmatmul.mubr.msk.bf16.gmra.mrb[24].mxu0 %vm827_vm3, %v2625_v41  ;;  %2563 = vmatmul.mubr.msk.bf16.gmra.mrb[24].mxu1 %vm827_vm3, %v2625_v41 }
 0x128   : > { %914 = vmatprep.mubr.bf16.mxu0 %v2671_v2  ;;  %1027 = vmatprep.mubr.bf16.mxu1 %v2671_v2 }
 0x12f   : > { %2556 = vmatmul.mubr.msk.bf16.gmra.mrb[28].mxu0 %vm827_vm3, %v2626_v42  ;;  %2564 = vmatmul.mubr.msk.bf16.gmra.mrb[28].mxu1 %vm827_vm3, %v2626_v42 }
 0x130   : > { %924 = vmatprep.mubr.bf16.mxu0 %v2671_v2  ;;  %1037 = vmatprep.mubr.bf16.mxu1 %v2671_v2 }
 0x137   : > { %2557 = vmatmul.mubr.msk.bf16.gmra.mrb[32].mxu0 %vm827_vm3, %v2627_v43  ;;  %2565 = vmatmul.mubr.msk.bf16.gmra.mrb[32].mxu1 %vm827_vm3, %v2627_v43 }
 0x138   : > { %934 = vmatprep.mubr.bf16.mxu0 %v2671_v2  ;;  %1047 = vmatprep.mubr.bf16.mxu1 %v2671_v2 }
 0x13f   : > { %2558 = vmatmul.mubr.msk.bf16.gmra.mrb[36].mxu0 %vm827_vm3, %v2628_v44  ;;  %2566 = vmatmul.mubr.msk.bf16.gmra.mrb[36].mxu1 %vm827_vm3, %v2628_v44 }
 0x140   : > { %944 = vmatprep.mubr.bf16.mxu0 %v2671_v2  ;;  %1057 = vmatprep.mubr.bf16.mxu1 %v2671_v2 }
 0x147   : > { %2559 = vmatmul.mubr.msk.bf16.gmra.mrb[40].mxu0 %vm827_vm3, %v2629_v45  ;;  %2567 = vmatmul.mubr.msk.bf16.gmra.mrb[40].mxu1 %vm827_vm3, %v2629_v45 }
 0x148   : > { %954 = vmatprep.mubr.bf16.mxu0 %v2671_v2  ;;  %1067 = vmatprep.mubr.bf16.mxu1 %v2671_v2 }
 0x14f   : > { %2560 = vmatmul.mubr.msk.bf16.gmra.mrb[44].mxu0 %vm827_vm3, %v2630_v46  ;;  %2568 = vmatmul.mubr.msk.bf16.gmra.mrb[44].mxu1 %vm827_vm3, %v2630_v46 }
 0x150   : > { %1590 = vmatprep.mubr.bf16.mxu0 %v2671_v2  ;;  %1783 = vmatprep.mubr.bf16.mxu1 %v2671_v2 }
 0x1ea   : > { %v886_v49 = vpop.f32.mrb[16].mxu0  ;;  %v999_v50 = vpop.f32.mrb[16].mxu1 }
 0x1eb   : > { %v887_v51 = vadd.f32 %v886_v49, %v710_v48  ;;  %v1000_v52 = vadd.f32 %v999_v50, %v710_v48  ;;  %v888_v53 = vpop.f32.mrb[17].mxu0  ;;  %v1001_v54 = vpop.f32.mrb[17].mxu1 }
 0x1ec   : > { %v889_v55 = vadd.f32 %v888_v53, %v710_v48  ;;  %v1002_v56 = vadd.f32 %v1001_v54, %v710_v48  ;;  %v890_v57 = vpop.f32.mrb[18].mxu0  ;;  %v1003_v58 = vpop.f32.mrb[18].mxu1 }
 0x1ed   : > { %v1078_v59 = vmul.f32 0.01, %v887_v51  ;;  %v1080_v60 = vmul.f32 0.01, %v1000_v52  ;;  %v891_v61 = vadd.f32 %v890_v57, %v715_v47  ;;  %v1004_v62 = vadd.f32 %v1003_v58, %v715_v47  ;;  %v892_v63 = vpop.f32.mrb[19].mxu0  ;;  %v1005_v0 = vpop.f32.mrb[19].mxu1 }
 0x1ee   : > { %v1079_v1 = vmul.f32 0.01, %v889_v55  ;;  %v1081_v3 = vmul.f32 0.01, %v1002_v56  ;;  %v893_v4 = vadd.f32 %v892_v63, %v715_v47  ;;  %v1006_v5 = vadd.f32 %v1005_v0, %v715_v47  ;;  %v735_v48 = vpop.permute.xlu1 %734  ;;  %v730_v49 = vpop.permute.xlu0 %729 }
 0x1ef   : > { %v1082_v6 = vmul.f32 0.01, %v891_v61  ;;  %v1084_v7 = vmul.f32 0.01, %v1004_v62  ;;  %v1142_v12 = vmax.f32 %v887_v51, %v1078_v59  ;;  %v1144_v13 = vmax.f32 %v1000_v52, %v1080_v60 }
 0x1f0   : > { %v1083_v8 = vmul.f32 0.01, %v893_v4  ;;  %v1085_v9 = vmul.f32 0.01, %v1006_v5  ;;  %v1143_v17 = vmax.f32 %v889_v55, %v1079_v1  ;;  %v1145_v18 = vmax.f32 %v1002_v56, %v1081_v3 }
 0x1f1   : > { %v1146_v14 = vmax.f32 %v891_v61, %v1082_v6  ;;  %v1148_v15 = vmax.f32 %v1004_v62, %v1084_v7 }
 0x1f2   : > { %v1147_v19 = vmax.f32 %v893_v4, %v1083_v8  ;;  %v1149_v20 = vmax.f32 %v1006_v5, %v1085_v9  ;;  %v896_v21 = vpop.f32.mrb[20].mxu0  ;;  %v1009_v22 = vpop.f32.mrb[20].mxu1 }
 0x1f3   : > { %v1206_v23 = vpack.c.bf16 %v1146_v14, %v1142_v12  ;;  %v1208_v16 = vpack.c.bf16 %v1148_v15, %v1144_v13  ;;  %v897_v24 = vadd.f32 %v896_v21, %v720_v11  ;;  %v1010_v25 = vadd.f32 %v1009_v22, %v720_v11  ;;  %v898_v26 = vpop.f32.mrb[21].mxu0  ;;  %v1011_v27 = vpop.f32.mrb[21].mxu1 }
 0x1f4   : > { %v899_v28 = vadd.f32 %v898_v26, %v720_v11  ;;  %v1012_v29 = vadd.f32 %v1011_v27, %v720_v11  ;;  %v900_v30 = vpop.f32.mrb[22].mxu0  ;;  %v1013_v31 = vpop.f32.mrb[22].mxu1  ;;  %v1207_v32 = vpack.c.bf16 %v1147_v19, %v1143_v17  ;;  %v1209_v33 = vpack.c.bf16 %v1149_v20, %v1145_v18 }
 0x1f5   : > { %v1086_v34 = vmul.f32 0.01, %v897_v24  ;;  %v1088_v36 = vmul.f32 0.01, %v1010_v25  ;;  %v901_v37 = vadd.f32 %v900_v30, %v725_v10  ;;  %v1014_v35 = vadd.f32 %v1013_v31, %v725_v10  ;;  %v902_v38 = vpop.f32.mrb[23].mxu0  ;;  %v1015_v39 = vpop.f32.mrb[23].mxu1 }
 0x1f6   : > { %v1087_v40 = vmul.f32 0.01, %v899_v28  ;;  %v1089_v41 = vmul.f32 0.01, %v1012_v29  ;;  %v903_v42 = vadd.f32 %v902_v38, %v725_v10  ;;  %v1016_v43 = vadd.f32 %v1015_v39, %v725_v10  ;;  %1558 = vmatprep.subr.bf16.mxu0 %v1207_v32  ;;  %1751 = vmatprep.subr.bf16.mxu1 %v1209_v33 }
 0x1f7   : > { %v1090_v44 = vmul.f32 0.01, %v901_v37  ;;  %v1092_v45 = vmul.f32 0.01, %v1014_v35  ;;  %1559 = vmatpush1.bf16.msra.mxu0 %v1206_v23  ;;  %1752 = vmatpush1.bf16.msra.mxu1 %v1208_v16  ;;  %v1150_v50 = vmax.f32 %v897_v24, %v1086_v34  ;;  %v1152_v51 = vmax.f32 %v1010_v25, %v1088_v36  ;;  %v745_v16 = vpop.permute.xlu1 %744  ;;  %v740_v24 = vpop.permute.xlu0 %739 }
 0x1f8   : > { %v1091_v46 = vmul.f32 0.01, %v903_v42  ;;  %v1093_v47 = vmul.f32 0.01, %v1016_v43  ;;  %v1151_v54 = vmax.f32 %v899_v28, %v1087_v40  ;;  %v1153_v55 = vmax.f32 %v1012_v29, %v1089_v41 }
 0x1f9   : > { %v1154_v52 = vmax.f32 %v901_v37, %v1090_v44  ;;  %v1156_v53 = vmax.f32 %v1014_v35, %v1092_v45 }
 0x1fa   : > { %v1155_v56 = vmax.f32 %v903_v42, %v1091_v46  ;;  %v1157_v57 = vmax.f32 %v1016_v43, %v1093_v47  ;;  %v906_v58 = vpop.f32.mrb[24].mxu0  ;;  %v1019_v59 = vpop.f32.mrb[24].mxu1 }
 0x1fb   : > { %v1210_v60 = vpack.c.bf16 %v1154_v52, %v1150_v50  ;;  %v1212_v61 = vpack.c.bf16 %v1156_v53, %v1152_v51  ;;  %v907_v62 = vadd.f32 %v906_v58, %v730_v49  ;;  %v1020_v63 = vadd.f32 %v1019_v59, %v730_v49  ;;  %v908_v0 = vpop.f32.mrb[25].mxu0  ;;  %v1021_v1 = vpop.f32.mrb[25].mxu1 }
 0x1fc   : > { %v909_v3 = vadd.f32 %v908_v0, %v730_v49  ;;  %v1022_v4 = vadd.f32 %v1021_v1, %v730_v49  ;;  %v910_v5 = vpop.f32.mrb[26].mxu0  ;;  %v1023_v6 = vpop.f32.mrb[26].mxu1  ;;  %v1211_v7 = vpack.c.bf16 %v1155_v56, %v1151_v54  ;;  %v1213_v8 = vpack.c.bf16 %v1157_v57, %v1153_v55 }
 0x1fd   : > { %v1094_v9 = vmul.f32 0.01, %v907_v62  ;;  %v1096_v10 = vmul.f32 0.01, %v1020_v63  ;;  %v911_v11 = vadd.f32 %v910_v5, %v735_v48  ;;  %v1024_v12 = vadd.f32 %v1023_v6, %v735_v48  ;;  %v912_v13 = vpop.f32.mrb[27].mxu0  ;;  %v1025_v14 = vpop.f32.mrb[27].mxu1 }
 0x1fe   : > { %v1095_v15 = vmul.f32 0.01, %v909_v3  ;;  %v1097_v17 = vmul.f32 0.01, %v1022_v4  ;;  %v913_v18 = vadd.f32 %v912_v13, %v735_v48  ;;  %v1026_v19 = vadd.f32 %v1025_v14, %v735_v48  ;;  %1560 = vmatprep.subr.bf16.mxu0 %v1211_v7  ;;  %1753 = vmatprep.subr.bf16.mxu1 %v1213_v8 }
 0x1ff   : > { %v1098_v20 = vmul.f32 0.01, %v911_v11  ;;  %v1100_v21 = vmul.f32 0.01, %v1024_v12  ;;  %1561 = vmatpush1.bf16.msra.mxu0 %v1210_v60  ;;  %1754 = vmatpush1.bf16.msra.mxu1 %v1212_v61  ;;  %v1158_v25 = vmax.f32 %v907_v62, %v1094_v9  ;;  %v1160_v26 = vmax.f32 %v1020_v63, %v1096_v10  ;;  %v755_v61 = vpop.permute.xlu1 %754  ;;  %v750_v62 = vpop.permute.xlu0 %749 }
 0x200   : > { %v1099_v22 = vmul.f32 0.01, %v913_v18  ;;  %v1101_v23 = vmul.f32 0.01, %v1026_v19  ;;  %v1159_v29 = vmax.f32 %v909_v3, %v1095_v15  ;;  %v1161_v30 = vmax.f32 %v1022_v4, %v1097_v17 }
 0x201   : > { %v1162_v27 = vmax.f32 %v911_v11, %v1098_v20  ;;  %v1164_v28 = vmax.f32 %v1024_v12, %v1100_v21 }
 0x202   : > { %v1163_v31 = vmax.f32 %v913_v18, %v1099_v22  ;;  %v1165_v32 = vmax.f32 %v1026_v19, %v1101_v23  ;;  %v916_v33 = vpop.f32.mrb[28].mxu0  ;;  %v1029_v34 = vpop.f32.mrb[28].mxu1 }
 0x203   : > { %v1214_v36 = vpack.c.bf16 %v1162_v27, %v1158_v25  ;;  %v1216_v37 = vpack.c.bf16 %v1164_v28, %v1160_v26  ;;  %v917_v35 = vadd.f32 %v916_v33, %v740_v24  ;;  %v1030_v38 = vadd.f32 %v1029_v34, %v740_v24  ;;  %v918_v39 = vpop.f32.mrb[29].mxu0  ;;  %v1031_v40 = vpop.f32.mrb[29].mxu1 }
 0x204   : > { %v919_v41 = vadd.f32 %v918_v39, %v740_v24  ;;  %v1032_v42 = vadd.f32 %v1031_v40, %v740_v24  ;;  %v920_v43 = vpop.f32.mrb[30].mxu0  ;;  %v1033_v44 = vpop.f32.mrb[30].mxu1  ;;  %v1215_v45 = vpack.c.bf16 %v1163_v31, %v1159_v29  ;;  %v1217_v46 = vpack.c.bf16 %v1165_v32, %v1161_v30 }
 0x205   : > { %v1102_v47 = vmul.f32 0.01, %v917_v35  ;;  %v1104_v48 = vmul.f32 0.01, %v1030_v38  ;;  %v921_v49 = vadd.f32 %v920_v43, %v745_v16  ;;  %v1034_v50 = vadd.f32 %v1033_v44, %v745_v16  ;;  %v922_v51 = vpop.f32.mrb[31].mxu0  ;;  %v1035_v52 = vpop.f32.mrb[31].mxu1 }
 0x206   : > { %v1103_v53 = vmul.f32 0.01, %v919_v41  ;;  %v1105_v54 = vmul.f32 0.01, %v1032_v42  ;;  %v923_v55 = vadd.f32 %v922_v51, %v745_v16  ;;  %v1036_v56 = vadd.f32 %v1035_v52, %v745_v16  ;;  %1562 = vmatprep.subr.bf16.mxu0 %v1215_v45  ;;  %1755 = vmatprep.subr.bf16.mxu1 %v1217_v46 }
 0x207   : > { %v1106_v57 = vmul.f32 0.01, %v921_v49  ;;  %v1108_v58 = vmul.f32 0.01, %v1034_v50  ;;  %1563 = vmatpush1.bf16.msra.mxu0 %v1214_v36  ;;  %1756 = vmatpush1.bf16.msra.mxu1 %v1216_v37  ;;  %v1166_v63 = vmax.f32 %v917_v35, %v1102_v47  ;;  %v1168_v0 = vmax.f32 %v1030_v38, %v1104_v48  ;;  %v765_v37 = vpop.permute.xlu1 %764  ;;  %v760_v35 = vpop.permute.xlu0 %759 }
 0x208   : > { %v1107_v59 = vmul.f32 0.01, %v923_v55  ;;  %v1109_v60 = vmul.f32 0.01, %v1036_v56  ;;  %v1167_v4 = vmax.f32 %v919_v41, %v1103_v53  ;;  %v1169_v5 = vmax.f32 %v1032_v42, %v1105_v54 }
 0x209   : > { %v1170_v1 = vmax.f32 %v921_v49, %v1106_v57  ;;  %v1172_v3 = vmax.f32 %v1034_v50, %v1108_v58 }
 0x20a   : > { %v1171_v6 = vmax.f32 %v923_v55, %v1107_v59  ;;  %v1173_v7 = vmax.f32 %v1036_v56, %v1109_v60  ;;  %v926_v8 = vpop.f32.mrb[32].mxu0  ;;  %v1039_v9 = vpop.f32.mrb[32].mxu1 }
 0x20b   : > { %v1218_v10 = vpack.c.bf16 %v1170_v1, %v1166_v63  ;;  %v1220_v11 = vpack.c.bf16 %v1172_v3, %v1168_v0  ;;  %v927_v12 = vadd.f32 %v926_v8, %v750_v62  ;;  %v1040_v13 = vadd.f32 %v1039_v9, %v750_v62  ;;  %v928_v14 = vpop.f32.mrb[33].mxu0  ;;  %v1041_v15 = vpop.f32.mrb[33].mxu1 }
 0x20c   : > { %v929_v17 = vadd.f32 %v928_v14, %v750_v62  ;;  %v1042_v18 = vadd.f32 %v1041_v15, %v750_v62  ;;  %v930_v19 = vpop.f32.mrb[34].mxu0  ;;  %v1043_v20 = vpop.f32.mrb[34].mxu1  ;;  %v1219_v21 = vpack.c.bf16 %v1171_v6, %v1167_v4  ;;  %v1221_v22 = vpack.c.bf16 %v1173_v7, %v1169_v5 }
 0x20d   : > { %v1110_v23 = vmul.f32 0.01, %v927_v12  ;;  %v1112_v16 = vmul.f32 0.01, %v1040_v13  ;;  %v931_v24 = vadd.f32 %v930_v19, %v755_v61  ;;  %v1044_v25 = vadd.f32 %v1043_v20, %v755_v61  ;;  %v932_v26 = vpop.f32.mrb[35].mxu0  ;;  %v1045_v27 = vpop.f32.mrb[35].mxu1 }
 0x20e   : > { %v1111_v28 = vmul.f32 0.01, %v929_v17  ;;  %v1113_v29 = vmul.f32 0.01, %v1042_v18  ;;  %v933_v30 = vadd.f32 %v932_v26, %v755_v61  ;;  %v1046_v31 = vadd.f32 %v1045_v27, %v755_v61  ;;  %1564 = vmatprep.subr.bf16.mxu0 %v1219_v21  ;;  %1757 = vmatprep.subr.bf16.mxu1 %v1221_v22 }
 0x20f   : > { %v1114_v32 = vmul.f32 0.01, %v931_v24  ;;  %v1116_v33 = vmul.f32 0.01, %v1044_v25  ;;  %1565 = vmatpush1.bf16.msra.mxu0 %v1218_v10  ;;  %1758 = vmatpush1.bf16.msra.mxu1 %v1220_v11  ;;  %v1174_v38 = vmax.f32 %v927_v12, %v1110_v23  ;;  %v1176_v39 = vmax.f32 %v1040_v13, %v1112_v16  ;;  %v775_v11 = vpop.permute.xlu1 %774  ;;  %v770_v12 = vpop.permute.xlu0 %769 }
 0x210   : > { %v1115_v34 = vmul.f32 0.01, %v933_v30  ;;  %v1117_v36 = vmul.f32 0.01, %v1046_v31  ;;  %v1175_v42 = vmax.f32 %v929_v17, %v1111_v28  ;;  %v1177_v43 = vmax.f32 %v1042_v18, %v1113_v29 }
 0x211   : > { %v1178_v40 = vmax.f32 %v931_v24, %v1114_v32  ;;  %v1180_v41 = vmax.f32 %v1044_v25, %v1116_v33 }
 0x212   : > { %v1179_v44 = vmax.f32 %v933_v30, %v1115_v34  ;;  %v1181_v45 = vmax.f32 %v1046_v31, %v1117_v36  ;;  %v936_v46 = vpop.f32.mrb[36].mxu0  ;;  %v1049_v47 = vpop.f32.mrb[36].mxu1 }
 0x213   : > { %v1222_v48 = vpack.c.bf16 %v1178_v40, %v1174_v38  ;;  %v1224_v49 = vpack.c.bf16 %v1180_v41, %v1176_v39  ;;  %v937_v50 = vadd.f32 %v936_v46, %v760_v35  ;;  %v1050_v51 = vadd.f32 %v1049_v47, %v760_v35  ;;  %v938_v52 = vpop.f32.mrb[37].mxu0  ;;  %v1051_v53 = vpop.f32.mrb[37].mxu1 }
 0x214   : > { %v939_v54 = vadd.f32 %v938_v52, %v760_v35  ;;  %v1052_v55 = vadd.f32 %v1051_v53, %v760_v35  ;;  %v940_v56 = vpop.f32.mrb[38].mxu0  ;;  %v1053_v57 = vpop.f32.mrb[38].mxu1  ;;  %v1223_v58 = vpack.c.bf16 %v1179_v44, %v1175_v42  ;;  %v1225_v59 = vpack.c.bf16 %v1181_v45, %v1177_v43 }
 0x215   : > { %v1118_v60 = vmul.f32 0.01, %v937_v50  ;;  %v1120_v61 = vmul.f32 0.01, %v1050_v51  ;;  %v941_v62 = vadd.f32 %v940_v56, %v765_v37  ;;  %v1054_v63 = vadd.f32 %v1053_v57, %v765_v37  ;;  %v942_v0 = vpop.f32.mrb[39].mxu0  ;;  %v1055_v1 = vpop.f32.mrb[39].mxu1 }
 0x216   : > { %v1119_v3 = vmul.f32 0.01, %v939_v54  ;;  %v1121_v4 = vmul.f32 0.01, %v1052_v55  ;;  %v943_v5 = vadd.f32 %v942_v0, %v765_v37  ;;  %v1056_v6 = vadd.f32 %v1055_v1, %v765_v37  ;;  %1566 = vmatprep.subr.bf16.mxu0 %v1223_v58  ;;  %1759 = vmatprep.subr.bf16.mxu1 %v1225_v59 }
 0x217   : > { %v1122_v7 = vmul.f32 0.01, %v941_v62  ;;  %v1124_v8 = vmul.f32 0.01, %v1054_v63  ;;  %1567 = vmatpush1.bf16.msra.mxu0 %v1222_v48  ;;  %1760 = vmatpush1.bf16.msra.mxu1 %v1224_v49  ;;  %v1182_v13 = vmax.f32 %v937_v50, %v1118_v60  ;;  %v1184_v14 = vmax.f32 %v1050_v51, %v1120_v61  ;;  %v785_v49 = vpop.permute.xlu1 %784  ;;  %v780_v50 = vpop.permute.xlu0 %779 }
 0x218   : > { %v1123_v9 = vmul.f32 0.01, %v943_v5  ;;  %v1125_v10 = vmul.f32 0.01, %v1056_v6  ;;  %v1183_v18 = vmax.f32 %v939_v54, %v1119_v3  ;;  %v1185_v19 = vmax.f32 %v1052_v55, %v1121_v4 }
 0x219   : > { %v1186_v15 = vmax.f32 %v941_v62, %v1122_v7  ;;  %v1188_v17 = vmax.f32 %v1054_v63, %v1124_v8 }
 0x21a   : > { %v1187_v20 = vmax.f32 %v943_v5, %v1123_v9  ;;  %v1189_v21 = vmax.f32 %v1056_v6, %v1125_v10  ;;  %v946_v22 = vpop.f32.mrb[40].mxu0  ;;  %v1059_v23 = vpop.f32.mrb[40].mxu1 }
 0x21b   : > { %v1226_v16 = vpack.c.bf16 %v1186_v15, %v1182_v13  ;;  %v1228_v24 = vpack.c.bf16 %v1188_v17, %v1184_v14  ;;  %v947_v25 = vadd.f32 %v946_v22, %v770_v12  ;;  %v1060_v26 = vadd.f32 %v1059_v23, %v770_v12  ;;  %v948_v27 = vpop.f32.mrb[41].mxu0  ;;  %v1061_v28 = vpop.f32.mrb[41].mxu1 }
 0x21c   : > { %v949_v29 = vadd.f32 %v948_v27, %v770_v12  ;;  %v1062_v30 = vadd.f32 %v1061_v28, %v770_v12  ;;  %v950_v31 = vpop.f32.mrb[42].mxu0  ;;  %v1063_v32 = vpop.f32.mrb[42].mxu1  ;;  %v1227_v33 = vpack.c.bf16 %v1187_v20, %v1183_v18  ;;  %v1229_v34 = vpack.c.bf16 %v1189_v21, %v1185_v19 }
 0x21d   : > { %v1126_v36 = vmul.f32 0.01, %v947_v25  ;;  %v1128_v37 = vmul.f32 0.01, %v1060_v26  ;;  %v951_v35 = vadd.f32 %v950_v31, %v775_v11  ;;  %v1064_v38 = vadd.f32 %v1063_v32, %v775_v11  ;;  %v952_v39 = vpop.f32.mrb[43].mxu0  ;;  %v1065_v40 = vpop.f32.mrb[43].mxu1 }
 0x21e   : > { %v1127_v41 = vmul.f32 0.01, %v949_v29  ;;  %v1129_v42 = vmul.f32 0.01, %v1062_v30  ;;  %v953_v43 = vadd.f32 %v952_v39, %v775_v11  ;;  %v1066_v44 = vadd.f32 %v1065_v40, %v775_v11  ;;  %1568 = vmatprep.subr.bf16.mxu0 %v1227_v33  ;;  %1761 = vmatprep.subr.bf16.mxu1 %v1229_v34  ;;  %v2634_v39 = vld [vmem:[%s3123_s5 + $0x18] sm:$0xff]   ;;  %v2635_v40 = vld [vmem:[%s3123_s5 + $0x20] sm:$0xff]  }
 0x21f   : > { %v1130_v45 = vmul.f32 0.01, %v951_v35  ;;  %v1132_v46 = vmul.f32 0.01, %v1064_v38  ;;  %1569 = vmatpush1.bf16.msra.mxu0 %v1226_v16  ;;  %1762 = vmatpush1.bf16.msra.mxu1 %v1228_v24  ;;  %v1190_v51 = vmax.f32 %v947_v25, %v1126_v36  ;;  %v1192_v52 = vmax.f32 %v1060_v26, %v1128_v37  ;;  %v2631_v37 = vld [vmem:[%s3123_s5] sm:$0xff]  }
 0x220   : > { %v1131_v47 = vmul.f32 0.01, %v953_v43  ;;  %v1133_v48 = vmul.f32 0.01, %v1066_v44  ;;  %v1191_v55 = vmax.f32 %v949_v29, %v1127_v41  ;;  %v1193_v56 = vmax.f32 %v1062_v30, %v1129_v42  ;;  %v2636_v41 = vld [vmem:[%s3123_s5 + $0x28] sm:$0xff]   ;;  %v2637_v42 = vld [vmem:[%s3123_s5 + $0x30] sm:$0xff]  }
 0x221   : > { %v1194_v53 = vmax.f32 %v951_v35, %v1130_v45  ;;  %v1196_v54 = vmax.f32 %v1064_v38, %v1132_v46  ;;  %v2632_v35 = vld [vmem:[%s3123_s5 + $0x8] sm:$0xff]   ;;  %v2633_v38 = vld [vmem:[%s3123_s5 + $0x10] sm:$0xff]  }
 0x222   : > { %v1195_v57 = vmax.f32 %v953_v43, %v1131_v47  ;;  %v1197_v58 = vmax.f32 %v1066_v44, %v1133_v48  ;;  %v956_v59 = vpop.f32.mrb[44].mxu0  ;;  %v1069_v60 = vpop.f32.mrb[44].mxu1  ;;  %v2638_v43 = vld [vmem:[%s3123_s5 + $0x38] sm:$0xff]   ;;  %v2639_v44 = vld [vmem:[%s3123_s5 + $0x40] sm:$0xff]   ;;  %v2640_v45 = vld [vmem:[%s3123_s5 + $0x48] sm:$0xff]  }
 0x223   : > { %v1230_v61 = vpack.c.bf16 %v1194_v53, %v1190_v51  ;;  %v1232_v62 = vpack.c.bf16 %v1196_v54, %v1192_v52  ;;  %v957_v63 = vadd.f32 %v956_v59, %v780_v50  ;;  %v1070_v0 = vadd.f32 %v1069_v60, %v780_v50  ;;  %v958_v1 = vpop.f32.mrb[45].mxu0  ;;  %v1071_v3 = vpop.f32.mrb[45].mxu1  ;;  %v2641_v46 = vld [vmem:[%s3123_s5 + $0x50] sm:$0xff]   ;;  %v2642_v47 = vld [vmem:[%s3123_s5 + $0x58] sm:$0xff]   ;;  %v2643_v48 = vld [vmem:[%s3123_s5 + $0x60] sm:$0xff]  }
 0x224   : > { %v959_v4 = vadd.f32 %v958_v1, %v780_v50  ;;  %v1072_v5 = vadd.f32 %v1071_v3, %v780_v50  ;;  %v960_v6 = vpop.f32.mrb[46].mxu0  ;;  %v1073_v7 = vpop.f32.mrb[46].mxu1  ;;  %v1231_v8 = vpack.c.bf16 %v1195_v57, %v1191_v55  ;;  %v1233_v9 = vpack.c.bf16 %v1197_v58, %v1193_v56  ;;  %v2645_v50 = vld [vmem:[%s3123_s5 + $0x70] sm:$0xff]   ;;  %v2646_v51 = vld [vmem:[%s3123_s5 + $0x78] sm:$0xff]  }
 0x225   : > { %v1134_v10 = vmul.f32 0.01, %v957_v63  ;;  %v1136_v11 = vmul.f32 0.01, %v1070_v0  ;;  %v961_v12 = vadd.f32 %v960_v6, %v785_v49  ;;  %v1074_v13 = vadd.f32 %v1073_v7, %v785_v49  ;;  %v962_v14 = vpop.f32.mrb[47].mxu0  ;;  %v1075_v15 = vpop.f32.mrb[47].mxu1 }
 0x226   : > { %v1135_v17 = vmul.f32 0.01, %v959_v4  ;;  %v1137_v18 = vmul.f32 0.01, %v1072_v5  ;;  %v963_v19 = vadd.f32 %v962_v14, %v785_v49  ;;  %v1076_v20 = vadd.f32 %v1075_v15, %v785_v49  ;;  %1570 = vmatprep.subr.bf16.mxu0 %v1231_v8  ;;  %1763 = vmatprep.subr.bf16.mxu1 %v1233_v9  ;;  %v2644_v49 = vld [vmem:[%s3123_s5 + $0x68] sm:$0xff]   ;;  %v1310_v52 = vpop.permute.xlu1 %1309  ;;  %v1305_v53 = vpop.permute.xlu0 %1304 }
 0x227   : > { %v1138_v21 = vmul.f32 0.01, %v961_v12  ;;  %v1140_v22 = vmul.f32 0.01, %v1074_v13  ;;  %1571 = vmatpush1.bf16.msra.mxu0 %v1230_v61  ;;  %1764 = vmatpush1.bf16.msra.mxu1 %v1232_v62  ;;  %v1198_v24 = vmax.f32 %v957_v63, %v1134_v10  ;;  %v1200_v25 = vmax.f32 %v1070_v0, %v1136_v11 }
 0x228   : > { %v1139_v23 = vmul.f32 0.01, %v963_v19  ;;  %v1141_v16 = vmul.f32 0.01, %v1076_v20  ;;  %v1199_v28 = vmax.f32 %v959_v4, %v1135_v17  ;;  %v1201_v29 = vmax.f32 %v1072_v5, %v1137_v18 }
 0x229   : > { %v1202_v26 = vmax.f32 %v961_v12, %v1138_v21  ;;  %v1204_v27 = vmax.f32 %v1074_v13, %v1140_v22 }
 0x22a   : > { %v1203_v30 = vmax.f32 %v963_v19, %v1139_v23  ;;  %v1205_v31 = vmax.f32 %v1076_v20, %v1141_v16  ;;  %v1320_v15 = vpop.permute.xlu1 %1319  ;;  %v1315_v17 = vpop.permute.xlu0 %1314 }
 0x22b   : > { %v1234_v32 = vpack.c.bf16 %v1202_v26, %v1198_v24  ;;  %v1236_v33 = vpack.c.bf16 %v1204_v27, %v1200_v25 }
 0x22c   : > { %v1235_v34 = vpack.c.bf16 %v1203_v30, %v1199_v28  ;;  %v1237_v36 = vpack.c.bf16 %v1205_v31, %v1201_v29 }
 0x22e   : > { %1572 = vmatprep.subr.bf16.mxu0 %v1235_v34  ;;  %1765 = vmatprep.subr.bf16.mxu1 %v1237_v36 }
 0x22f   : > { %1573 = vmatpush1.bf16.msra.mxu0 %v1234_v32  ;;  %1766 = vmatpush1.bf16.msra.mxu1 %v1236_v33 }
 0x232   : > { %1591 = vmatmul.mubr.bf16.vlgmr.msra.gmra.mrb[48].mxu0 %v2631_v37  ;;  %1784 = vmatmul.mubr.bf16.vlgmr.msra.gmra.mrb[48].mxu1 %v2631_v37 }
 0x233   : > { %1600 = vmatprep.mubr.bf16.mxu0 %v2671_v2  ;;  %1793 = vmatprep.mubr.bf16.mxu1 %v2671_v2 }
 0x23a   : > { %1601 = vmatmul.mubr.bf16.gmra.mrb[52].mxu0 %v2632_v35  ;;  %1794 = vmatmul.mubr.bf16.gmra.mrb[52].mxu1 %v2632_v35 }
 0x23b   : > { %1610 = vmatprep.mubr.bf16.mxu0 %v2671_v2  ;;  %1803 = vmatprep.mubr.bf16.mxu1 %v2671_v2 }
 0x242   : > { %1611 = vmatmul.mubr.bf16.gmra.mrb[56].mxu0 %v2633_v38  ;;  %1804 = vmatmul.mubr.bf16.gmra.mrb[56].mxu1 %v2633_v38 }
 0x243   : > { %1620 = vmatprep.mubr.bf16.mxu0 %v2671_v2  ;;  %1813 = vmatprep.mubr.bf16.mxu1 %v2671_v2 }
 0x24a   : > { %1621 = vmatmul.mubr.bf16.gmra.mrb[60].mxu0 %v2634_v39  ;;  %1814 = vmatmul.mubr.bf16.gmra.mrb[60].mxu1 %v2634_v39 }
 0x24b   : > { %1630 = vmatprep.mubr.bf16.mxu0 %v2671_v2  ;;  %1823 = vmatprep.mubr.bf16.mxu1 %v2671_v2 }
 0x252   : > { %1631 = vmatmul.mubr.bf16.gmra.mrb[64].mxu0 %v2635_v40  ;;  %1824 = vmatmul.mubr.bf16.gmra.mrb[64].mxu1 %v2635_v40 }
 0x253   : > { %1640 = vmatprep.mubr.bf16.mxu0 %v2671_v2  ;;  %1833 = vmatprep.mubr.bf16.mxu1 %v2671_v2 }
 0x25a   : > { %1641 = vmatmul.mubr.bf16.gmra.mrb[68].mxu0 %v2636_v41  ;;  %1834 = vmatmul.mubr.bf16.gmra.mrb[68].mxu1 %v2636_v41 }
 0x25b   : > { %1650 = vmatprep.mubr.bf16.mxu0 %v2671_v2  ;;  %1843 = vmatprep.mubr.bf16.mxu1 %v2671_v2 }
 0x262   : > { %1651 = vmatmul.mubr.bf16.gmra.mrb[72].mxu0 %v2637_v42  ;;  %1844 = vmatmul.mubr.bf16.gmra.mrb[72].mxu1 %v2637_v42 }
 0x263   : > { %1660 = vmatprep.mubr.bf16.mxu0 %v2671_v2  ;;  %1853 = vmatprep.mubr.bf16.mxu1 %v2671_v2 }
 0x26a   : > { %1661 = vmatmul.mubr.bf16.gmra.mrb[76].mxu0 %v2638_v43  ;;  %1854 = vmatmul.mubr.bf16.gmra.mrb[76].mxu1 %v2638_v43 }
 0x26b   : > { %1670 = vmatprep.mubr.bf16.mxu0 %v2671_v2  ;;  %1863 = vmatprep.mubr.bf16.mxu1 %v2671_v2 }
 0x272   : > { %1671 = vmatmul.mubr.bf16.gmra.mrb[80].mxu0 %v2639_v44  ;;  %1864 = vmatmul.mubr.bf16.gmra.mrb[80].mxu1 %v2639_v44 }
 0x273   : > { %1680 = vmatprep.mubr.bf16.mxu0 %v2671_v2  ;;  %1873 = vmatprep.mubr.bf16.mxu1 %v2671_v2 }
 0x27a   : > { %1681 = vmatmul.mubr.bf16.gmra.mrb[84].mxu0 %v2640_v45  ;;  %1874 = vmatmul.mubr.bf16.gmra.mrb[84].mxu1 %v2640_v45 }
 0x27b   : > { %1690 = vmatprep.mubr.bf16.mxu0 %v2671_v2  ;;  %1883 = vmatprep.mubr.bf16.mxu1 %v2671_v2 }
 0x282   : > { %1691 = vmatmul.mubr.bf16.gmra.mrb[88].mxu0 %v2641_v46  ;;  %1884 = vmatmul.mubr.bf16.gmra.mrb[88].mxu1 %v2641_v46 }
 0x283   : > { %1700 = vmatprep.mubr.bf16.mxu0 %v2671_v2  ;;  %1893 = vmatprep.mubr.bf16.mxu1 %v2671_v2 }
 0x28a   : > { %1701 = vmatmul.mubr.bf16.gmra.mrb[92].mxu0 %v2642_v47  ;;  %1894 = vmatmul.mubr.bf16.gmra.mrb[92].mxu1 %v2642_v47 }
 0x28b   : > { %1710 = vmatprep.mubr.bf16.mxu0 %v2671_v2  ;;  %1903 = vmatprep.mubr.bf16.mxu1 %v2671_v2 }
 0x292   : > { %1711 = vmatmul.mubr.bf16.gmra.mrb[96].mxu0 %v2643_v48  ;;  %1904 = vmatmul.mubr.bf16.gmra.mrb[96].mxu1 %v2643_v48 }
 0x293   : > { %1720 = vmatprep.mubr.bf16.mxu0 %v2671_v2  ;;  %1913 = vmatprep.mubr.bf16.mxu1 %v2671_v2 }
 0x29a   : > { %1721 = vmatmul.mubr.bf16.gmra.mrb[100].mxu0 %v2644_v49  ;;  %1914 = vmatmul.mubr.bf16.gmra.mrb[100].mxu1 %v2644_v49 }
 0x29b   : > { %1730 = vmatprep.mubr.bf16.mxu0 %v2671_v2  ;;  %1923 = vmatprep.mubr.bf16.mxu1 %v2671_v2 }
 0x2a2   : > { %1731 = vmatmul.mubr.bf16.gmra.mrb[104].mxu0 %v2645_v50  ;;  %1924 = vmatmul.mubr.bf16.gmra.mrb[104].mxu1 %v2645_v50 }
 0x2a3   : > { %1740 = vmatprep.mubr.bf16.mxu0 %v2671_v2  ;;  %1933 = vmatprep.mubr.bf16.mxu1 %v2671_v2 }
 0x2aa   : > { %1741 = vmatmul.mubr.bf16.gmra.mrb[108].mxu0 %v2646_v51  ;;  %1934 = vmatmul.mubr.bf16.gmra.mrb[108].mxu1 %v2646_v51 }
 0x305   : > { %v1592_v54 = vpop.f32.mrb[48].mxu0  ;;  %v1785_v55 = vpop.f32.mrb[48].mxu1 }
 0x306   : > { %v1593_v56 = vadd.f32 %v1592_v54, %v1305_v53  ;;  %v1786_v57 = vadd.f32 %v1785_v55, %v1305_v53  ;;  %v1594_v58 = vpop.f32.mrb[49].mxu0  ;;  %v1787_v59 = vpop.f32.mrb[49].mxu1 }
 0x307   : > { %v1595_v60 = vadd.f32 %v1594_v58, %v1305_v53  ;;  %v1788_v61 = vadd.f32 %v1787_v59, %v1305_v53  ;;  %v1596_v62 = vpop.f32.mrb[50].mxu0  ;;  %v1789_v63 = vpop.f32.mrb[50].mxu1 }
 0x308   : > { %v1944_v0 = vmul.f32 0.01, %v1593_v56  ;;  %v1597_v2 = vadd.f32 %v1596_v62, %v1310_v52  ;;  %v1790_v1 = vadd.f32 %v1789_v63, %v1310_v52  ;;  %v1598_v3 = vpop.f32.mrb[51].mxu0  ;;  %v1791_v4 = vpop.f32.mrb[51].mxu1  ;;  %v1946_v5 = vmul.f32 0.01, %v1786_v57 }
 0x309   : > { %v1945_v6 = vmul.f32 0.01, %v1595_v60  ;;  %v1599_v7 = vadd.f32 %v1598_v3, %v1310_v52  ;;  %v1792_v8 = vadd.f32 %v1791_v4, %v1310_v52  ;;  %v1947_v10 = vmul.f32 0.01, %v1788_v61  ;;  %v1330_v52 = vpop.permute.xlu1 %1329  ;;  %v1325_v53 = vpop.permute.xlu0 %1324 }
 0x30a   : > { %v2072_v9 = vmax.f32 %v1593_v56, %v1944_v0  ;;  %v1948_v11 = vmul.f32 0.01, %v1597_v2  ;;  %v1950_v12 = vmul.f32 0.01, %v1790_v1  ;;  %v2074_v20 = vmax.f32 %v1786_v57, %v1946_v5 }
 0x30b   : > { %v2073_v13 = vmax.f32 %v1595_v60, %v1945_v6  ;;  %v1949_v14 = vmul.f32 0.01, %v1599_v7  ;;  %v1951_v19 = vmul.f32 0.01, %v1792_v8  ;;  %v2075_v24 = vmax.f32 %v1788_v61, %v1947_v10 }
 0x30c   : > { %v2076_v18 = vmax.f32 %v1597_v2, %v1948_v11  ;;  %v2078_v25 = vmax.f32 %v1790_v1, %v1950_v12 }
 0x30d   : > { %v2200_v21 = vmax.f32 %v2072_v9, %v2073_v13  ;;  %v2077_v22 = vmax.f32 %v1599_v7, %v1949_v14  ;;  %v1602_v23 = vpop.f32.mrb[52].mxu0  ;;  %v1795_v16 = vpop.f32.mrb[52].mxu1  ;;  %v2079_v37 = vmax.f32 %v1792_v8, %v1951_v19 }
 0x30e   : > { %v1603_v26 = vadd.f32 %v1602_v23, %v1315_v17  ;;  %v1796_v27 = vadd.f32 %v1795_v16, %v1315_v17  ;;  %v1604_v28 = vpop.f32.mrb[53].mxu0  ;;  %v1797_v29 = vpop.f32.mrb[53].mxu1 }
 0x30f   : > { %v2232_v30 = vmax.f32 %v2200_v21, %v2074_v20  ;;  %v2201_v31 = vmax.f32 %v2076_v18, %v2077_v22  ;;  %v1605_v32 = vadd.f32 %v1604_v28, %v1315_v17  ;;  %v1798_v33 = vadd.f32 %v1797_v29, %v1315_v17  ;;  %v1606_v34 = vpop.f32.mrb[54].mxu0  ;;  %v1799_v36 = vpop.f32.mrb[54].mxu1 }
 0x310   : > { %v1952_v35 = vmul.f32 0.01, %v1603_v26  ;;  %v1954_v38 = vmul.f32 0.01, %v1796_v27  ;;  %v1607_v39 = vadd.f32 %v1606_v34, %v1320_v15  ;;  %v1608_v40 = vpop.f32.mrb[55].mxu0  ;;  %v1801_v41 = vpop.f32.mrb[55].mxu1  ;;  %v1800_v45 = vadd.f32 %v1799_v36, %v1320_v15 }
 0x311   : > { %v2264_v42 = vmax.f32 %v2232_v30, %v2075_v24  ;;  %v2233_v43 = vmax.f32 %v2201_v31, %v2078_v25  ;;  %v1953_v44 = vmul.f32 0.01, %v1605_v32  ;;  %v1955_v47 = vmul.f32 0.01, %v1798_v33  ;;  %v1335_v28 = vpop.permute.xlu0 %1334 }
 0x312   : > { %v2080_v46 = vmax.f32 %v1603_v26, %v1952_v35  ;;  %v1956_v48 = vmul.f32 0.01, %v1607_v39  ;;  %v1609_v51 = vadd.f32 %v1608_v40, %v1320_v15  ;;  %v2082_v54 = vmax.f32 %v1796_v27, %v1954_v38  ;;  %v1340_v27 = vpop.permute.xlu1 %1339 }
 0x313   : > { %2300 = vst [vmem:[%s3075_s9] sm:$0xff] %v2264_v42  ;;  %v2265_v49 = vmax.f32 %v2233_v43, %v2079_v37  ;;  %v2081_v50 = vmax.f32 %v1605_v32, %v1953_v44  ;;  %v1802_v55 = vadd.f32 %v1801_v41, %v1320_v15  ;;  %v1958_v58 = vmul.f32 0.01, %v1800_v45 }
 0x314   : > { %v2084_v57 = vmax.f32 %v1607_v39, %v1956_v48  ;;  %v1957_v59 = vmul.f32 0.01, %v1609_v51  ;;  %v2083_v62 = vmax.f32 %v1798_v33, %v1955_v47 }
 0x315   : > { %2301 = vst [vmem:[%s3075_s9 + $0x8] sm:$0xff] %v2265_v49  ;;  %v2202_v56 = vmax.f32 %v2080_v46, %v2081_v50  ;;  %v1612_v60 = vpop.f32.mrb[56].mxu0  ;;  %v1805_v61 = vpop.f32.mrb[56].mxu1  ;;  %v1959_v63 = vmul.f32 0.01, %v1802_v55  ;;  %v2086_v17 = vmax.f32 %v1800_v45, %v1958_v58 }
 0x316   : > { %v1613_v0 = vadd.f32 %v1612_v60, %v1325_v53  ;;  %v1806_v2 = vadd.f32 %v1805_v61, %v1325_v53  ;;  %v1614_v1 = vpop.f32.mrb[57].mxu0  ;;  %v1807_v3 = vpop.f32.mrb[57].mxu1  ;;  %v2085_v5 = vmax.f32 %v1609_v51, %v1957_v59 }
 0x317   : > { %v2234_v4 = vmax.f32 %v2202_v56, %v2082_v54  ;;  %v1615_v6 = vadd.f32 %v1614_v1, %v1325_v53  ;;  %v1808_v7 = vadd.f32 %v1807_v3, %v1325_v53  ;;  %v1616_v8 = vpop.f32.mrb[58].mxu0  ;;  %v1809_v9 = vpop.f32.mrb[58].mxu1  ;;  %v2087_v16 = vmax.f32 %v1802_v55, %v1959_v63 }
 0x318   : > { %v1960_v10 = vmul.f32 0.01, %v1613_v0  ;;  %v1962_v11 = vmul.f32 0.01, %v1806_v2  ;;  %v1617_v12 = vadd.f32 %v1616_v8, %v1330_v52  ;;  %v1618_v13 = vpop.f32.mrb[59].mxu0  ;;  %v1811_v14 = vpop.f32.mrb[59].mxu1  ;;  %v2203_v18 = vmax.f32 %v2084_v57, %v2085_v5 }
 0x319   : > { %v2266_v15 = vmax.f32 %v2234_v4, %v2083_v62  ;;  %v1961_v19 = vmul.f32 0.01, %v1615_v6  ;;  %v1963_v21 = vmul.f32 0.01, %v1808_v7  ;;  %v1810_v23 = vadd.f32 %v1809_v9, %v1330_v52  ;;  %v1350_v3 = vpop.permute.xlu1 %1349  ;;  %v1345_v4 = vpop.permute.xlu0 %1344 }
 0x31a   : > { %v2088_v20 = vmax.f32 %v1613_v0, %v1960_v10  ;;  %v1964_v22 = vmul.f32 0.01, %v1617_v12  ;;  %v2235_v24 = vmax.f32 %v2203_v18, %v2086_v17  ;;  %v1619_v26 = vadd.f32 %v1618_v13, %v1330_v52 }
 0x31b   : > { %2302 = vst [vmem:[%s3075_s9 + $0x10] sm:$0xff] %v2266_v15  ;;  %v2089_v25 = vmax.f32 %v1615_v6, %v1961_v19  ;;  %v2090_v29 = vmax.f32 %v1806_v2, %v1962_v11  ;;  %v1812_v31 = vadd.f32 %v1811_v14, %v1330_v52  ;;  %v1966_v34 = vmul.f32 0.01, %v1810_v23 }
 0x31c   : > { %v2092_v30 = vmax.f32 %v1617_v12, %v1964_v22  ;;  %v2267_v32 = vmax.f32 %v2235_v24, %v2087_v16  ;;  %v1965_v36 = vmul.f32 0.01, %v1619_v26  ;;  %v2091_v38 = vmax.f32 %v1808_v7, %v1963_v21 }
 0x31d   : > { %v2204_v33 = vmax.f32 %v2088_v20, %v2089_v25  ;;  %v1622_v37 = vpop.f32.mrb[60].mxu0  ;;  %v1815_v35 = vpop.f32.mrb[60].mxu1  ;;  %v1967_v39 = vmul.f32 0.01, %v1812_v31  ;;  %v2094_v56 = vmax.f32 %v1810_v23, %v1966_v34 }
 0x31e   : > { %v1623_v40 = vadd.f32 %v1622_v37, %v1335_v28  ;;  %v1816_v41 = vadd.f32 %v1815_v35, %v1335_v28  ;;  %v1624_v42 = vpop.f32.mrb[61].mxu0  ;;  %v1817_v43 = vpop.f32.mrb[61].mxu1  ;;  %2303 = vst [vmem:[%s3075_s9 + $0x18] sm:$0xff] %v2267_v32  ;;  %v2093_v45 = vmax.f32 %v1619_v26, %v1965_v36 }
 0x31f   : > { %v2236_v44 = vmax.f32 %v2204_v33, %v2090_v29  ;;  %v1625_v46 = vadd.f32 %v1624_v42, %v1335_v28  ;;  %v1818_v47 = vadd.f32 %v1817_v43, %v1335_v28  ;;  %v1626_v48 = vpop.f32.mrb[62].mxu0  ;;  %v1819_v49 = vpop.f32.mrb[62].mxu1  ;;  %v2095_v63 = vmax.f32 %v1812_v31, %v1967_v39 }
 0x320   : > { %v1968_v50 = vmul.f32 0.01, %v1623_v40  ;;  %v1970_v51 = vmul.f32 0.01, %v1816_v41  ;;  %v1627_v52 = vadd.f32 %v1626_v48, %v1340_v27  ;;  %v1628_v53 = vpop.f32.mrb[63].mxu0  ;;  %v1821_v54 = vpop.f32.mrb[63].mxu1  ;;  %v2205_v57 = vmax.f32 %v2092_v30, %v2093_v45 }
 0x321   : > { %v2268_v55 = vmax.f32 %v2236_v44, %v2091_v38  ;;  %v1969_v58 = vmul.f32 0.01, %v1625_v46  ;;  %v1971_v60 = vmul.f32 0.01, %v1818_v47  ;;  %v1820_v62 = vadd.f32 %v1819_v49, %v1340_v27  ;;  %v1360_v43 = vpop.permute.xlu1 %1359  ;;  %v1355_v44 = vpop.permute.xlu0 %1354 }
 0x322   : > { %v2096_v59 = vmax.f32 %v1623_v40, %v1968_v50  ;;  %v1972_v61 = vmul.f32 0.01, %v1627_v52  ;;  %v2237_v0 = vmax.f32 %v2205_v57, %v2094_v56  ;;  %v1629_v1 = vadd.f32 %v1628_v53, %v1340_v27 }
 0x323   : > { %2304 = vst [vmem:[%s3075_s9 + $0x20] sm:$0xff] %v2268_v55  ;;  %v2097_v2 = vmax.f32 %v1625_v46, %v1969_v58  ;;  %v2098_v5 = vmax.f32 %v1816_v41, %v1970_v51  ;;  %v1822_v7 = vadd.f32 %v1821_v54, %v1340_v27  ;;  %v1974_v10 = vmul.f32 0.01, %v1820_v62 }
 0x324   : > { %v2100_v6 = vmax.f32 %v1627_v52, %v1972_v61  ;;  %v2269_v8 = vmax.f32 %v2237_v0, %v2095_v63  ;;  %v1973_v11 = vmul.f32 0.01, %v1629_v1  ;;  %v2099_v14 = vmax.f32 %v1818_v47, %v1971_v60 }
 0x325   : > { %v2206_v9 = vmax.f32 %v2096_v59, %v2097_v2  ;;  %v1632_v12 = vpop.f32.mrb[64].mxu0  ;;  %v1825_v13 = vpop.f32.mrb[64].mxu1  ;;  %v1975_v15 = vmul.f32 0.01, %v1822_v7  ;;  %v2102_v32 = vmax.f32 %v1820_v62, %v1974_v10 }
 0x326   : > { %v1633_v17 = vadd.f32 %v1632_v12, %v1345_v4  ;;  %v1826_v18 = vadd.f32 %v1825_v13, %v1345_v4  ;;  %v1634_v19 = vpop.f32.mrb[65].mxu0  ;;  %v1827_v20 = vpop.f32.mrb[65].mxu1  ;;  %2305 = vst [vmem:[%s3075_s9 + $0x28] sm:$0xff] %v2269_v8  ;;  %v2101_v22 = vmax.f32 %v1629_v1, %v1973_v11 }
 0x327   : > { %v2238_v21 = vmax.f32 %v2206_v9, %v2098_v5  ;;  %v1635_v23 = vadd.f32 %v1634_v19, %v1345_v4  ;;  %v1828_v16 = vadd.f32 %v1827_v20, %v1345_v4  ;;  %v1636_v24 = vpop.f32.mrb[66].mxu0  ;;  %v1829_v25 = vpop.f32.mrb[66].mxu1  ;;  %v2103_v39 = vmax.f32 %v1822_v7, %v1975_v15 }
 0x328   : > { %v1976_v26 = vmul.f32 0.01, %v1633_v17  ;;  %v1978_v27 = vmul.f32 0.01, %v1826_v18  ;;  %v1637_v28 = vadd.f32 %v1636_v24, %v1350_v3  ;;  %v1638_v29 = vpop.f32.mrb[67].mxu0  ;;  %v1831_v30 = vpop.f32.mrb[67].mxu1  ;;  %v2207_v33 = vmax.f32 %v2100_v6, %v2101_v22 }
 0x329   : > { %v2270_v31 = vmax.f32 %v2238_v21, %v2099_v14  ;;  %v1977_v34 = vmul.f32 0.01, %v1635_v23  ;;  %v1979_v37 = vmul.f32 0.01, %v1828_v16  ;;  %v1830_v38 = vadd.f32 %v1829_v25, %v1350_v3  ;;  %v1370_v20 = vpop.permute.xlu1 %1369  ;;  %v1365_v21 = vpop.permute.xlu0 %1364 }
 0x32a   : > { %v2104_v36 = vmax.f32 %v1633_v17, %v1976_v26  ;;  %v1980_v35 = vmul.f32 0.01, %v1637_v28  ;;  %v2239_v40 = vmax.f32 %v2207_v33, %v2102_v32  ;;  %v1639_v42 = vadd.f32 %v1638_v29, %v1350_v3 }
 0x32b   : > { %2306 = vst [vmem:[%s3075_s9 + $0x30] sm:$0xff] %v2270_v31  ;;  %v2105_v41 = vmax.f32 %v1635_v23, %v1977_v34  ;;  %v2106_v45 = vmax.f32 %v1826_v18, %v1978_v27  ;;  %v1832_v47 = vadd.f32 %v1831_v30, %v1350_v3  ;;  %v1982_v50 = vmul.f32 0.01, %v1830_v38 }
 0x32c   : > { %v2108_v46 = vmax.f32 %v1637_v28, %v1980_v35  ;;  %v2271_v48 = vmax.f32 %v2239_v40, %v2103_v39  ;;  %v1981_v51 = vmul.f32 0.01, %v1639_v42  ;;  %v2107_v54 = vmax.f32 %v1828_v16, %v1979_v37 }
 0x32d   : > { %v2208_v49 = vmax.f32 %v2104_v36, %v2105_v41  ;;  %v1642_v52 = vpop.f32.mrb[68].mxu0  ;;  %v1835_v53 = vpop.f32.mrb[68].mxu1  ;;  %v1983_v55 = vmul.f32 0.01, %v1832_v47  ;;  %v2110_v8 = vmax.f32 %v1830_v38, %v1982_v50 }
 0x32e   : > { %v1643_v56 = vadd.f32 %v1642_v52, %v1355_v44  ;;  %v1836_v57 = vadd.f32 %v1835_v53, %v1355_v44  ;;  %v1644_v58 = vpop.f32.mrb[69].mxu0  ;;  %v1837_v59 = vpop.f32.mrb[69].mxu1  ;;  %2307 = vst [vmem:[%s3075_s9 + $0x38] sm:$0xff] %v2271_v48  ;;  %v2109_v61 = vmax.f32 %v1639_v42, %v1981_v51 }
 0x32f   : > { %v2240_v60 = vmax.f32 %v2208_v49, %v2106_v45  ;;  %v1645_v62 = vadd.f32 %v1644_v58, %v1355_v44  ;;  %v1838_v63 = vadd.f32 %v1837_v59, %v1355_v44  ;;  %v1646_v0 = vpop.f32.mrb[70].mxu0  ;;  %v1839_v2 = vpop.f32.mrb[70].mxu1  ;;  %v2111_v15 = vmax.f32 %v1832_v47, %v1983_v55 }
 0x330   : > { %v1984_v1 = vmul.f32 0.01, %v1643_v56  ;;  %v1986_v3 = vmul.f32 0.01, %v1836_v57  ;;  %v1647_v4 = vadd.f32 %v1646_v0, %v1360_v43  ;;  %v1648_v5 = vpop.f32.mrb[71].mxu0  ;;  %v1841_v6 = vpop.f32.mrb[71].mxu1  ;;  %v2209_v9 = vmax.f32 %v2108_v46, %v2109_v61 }
 0x331   : > { %v2272_v7 = vmax.f32 %v2240_v60, %v2107_v54  ;;  %v1985_v10 = vmul.f32 0.01, %v1645_v62  ;;  %v1987_v12 = vmul.f32 0.01, %v1838_v63  ;;  %v1840_v14 = vadd.f32 %v1839_v2, %v1360_v43  ;;  %v1380_v59 = vpop.permute.xlu1 %1379  ;;  %v1375_v60 = vpop.permute.xlu0 %1374 }
 0x332   : > { %v2112_v11 = vmax.f32 %v1643_v56, %v1984_v1  ;;  %v1988_v13 = vmul.f32 0.01, %v1647_v4  ;;  %v2241_v17 = vmax.f32 %v2209_v9, %v2110_v8  ;;  %v1649_v19 = vadd.f32 %v1648_v5, %v1360_v43 }
 0x333   : > { %2308 = vst [vmem:[%s3075_s9 + $0x40] sm:$0xff] %v2272_v7  ;;  %v2113_v18 = vmax.f32 %v1645_v62, %v1985_v10  ;;  %v2114_v22 = vmax.f32 %v1836_v57, %v1986_v3  ;;  %v1842_v16 = vadd.f32 %v1841_v6, %v1360_v43  ;;  %v1990_v26 = vmul.f32 0.01, %v1840_v14 }
 0x334   : > { %v2116_v23 = vmax.f32 %v1647_v4, %v1988_v13  ;;  %v2273_v24 = vmax.f32 %v2241_v17, %v2111_v15  ;;  %v1989_v27 = vmul.f32 0.01, %v1649_v19  ;;  %v2115_v30 = vmax.f32 %v1838_v63, %v1987_v12 }
 0x335   : > { %v2210_v25 = vmax.f32 %v2112_v11, %v2113_v18  ;;  %v1652_v28 = vpop.f32.mrb[72].mxu0  ;;  %v1845_v29 = vpop.f32.mrb[72].mxu1  ;;  %v1991_v31 = vmul.f32 0.01, %v1842_v16  ;;  %v2118_v48 = vmax.f32 %v1840_v14, %v1990_v26 }
 0x336   : > { %v1653_v32 = vadd.f32 %v1652_v28, %v1365_v21  ;;  %v1846_v33 = vadd.f32 %v1845_v29, %v1365_v21  ;;  %v1654_v34 = vpop.f32.mrb[73].mxu0  ;;  %v1847_v36 = vpop.f32.mrb[73].mxu1  ;;  %2309 = vst [vmem:[%s3075_s9 + $0x48] sm:$0xff] %v2273_v24  ;;  %v2117_v35 = vmax.f32 %v1649_v19, %v1989_v27 }
 0x337   : > { %v2242_v37 = vmax.f32 %v2210_v25, %v2114_v22  ;;  %v1655_v38 = vadd.f32 %v1654_v34, %v1365_v21  ;;  %v1848_v39 = vadd.f32 %v1847_v36, %v1365_v21  ;;  %v1656_v40 = vpop.f32.mrb[74].mxu0  ;;  %v1849_v41 = vpop.f32.mrb[74].mxu1  ;;  %v2119_v55 = vmax.f32 %v1842_v16, %v1991_v31 }
 0x338   : > { %v1992_v42 = vmul.f32 0.01, %v1653_v32  ;;  %v1994_v43 = vmul.f32 0.01, %v1846_v33  ;;  %v1657_v44 = vadd.f32 %v1656_v40, %v1370_v20  ;;  %v1658_v45 = vpop.f32.mrb[75].mxu0  ;;  %v1851_v46 = vpop.f32.mrb[75].mxu1  ;;  %v2211_v49 = vmax.f32 %v2116_v23, %v2117_v35 }
 0x339   : > { %v2274_v47 = vmax.f32 %v2242_v37, %v2115_v30  ;;  %v1993_v50 = vmul.f32 0.01, %v1655_v38  ;;  %v1995_v52 = vmul.f32 0.01, %v1848_v39  ;;  %v1850_v54 = vadd.f32 %v1849_v41, %v1370_v20  ;;  %v1390_v36 = vpop.permute.xlu1 %1389  ;;  %v1385_v37 = vpop.permute.xlu0 %1384 }
 0x33a   : > { %v2120_v51 = vmax.f32 %v1653_v32, %v1992_v42  ;;  %v1996_v53 = vmul.f32 0.01, %v1657_v44  ;;  %v2243_v56 = vmax.f32 %v2211_v49, %v2118_v48  ;;  %v1659_v58 = vadd.f32 %v1658_v45, %v1370_v20 }
 0x33b   : > { %2310 = vst [vmem:[%s3075_s9 + $0x50] sm:$0xff] %v2274_v47  ;;  %v2121_v57 = vmax.f32 %v1655_v38, %v1993_v50  ;;  %v2122_v61 = vmax.f32 %v1846_v33, %v1994_v43  ;;  %v1852_v63 = vadd.f32 %v1851_v46, %v1370_v20  ;;  %v1998_v1 = vmul.f32 0.01, %v1850_v54 }
 0x33c   : > { %v2124_v62 = vmax.f32 %v1657_v44, %v1996_v53  ;;  %v2275_v0 = vmax.f32 %v2243_v56, %v2119_v55  ;;  %v1997_v3 = vmul.f32 0.01, %v1659_v58  ;;  %v2123_v6 = vmax.f32 %v1848_v39, %v1995_v52 }
 0x33d   : > { %v2212_v2 = vmax.f32 %v2120_v51, %v2121_v57  ;;  %v1662_v4 = vpop.f32.mrb[76].mxu0  ;;  %v1855_v5 = vpop.f32.mrb[76].mxu1  ;;  %v1999_v7 = vmul.f32 0.01, %v1852_v63  ;;  %v2126_v24 = vmax.f32 %v1850_v54, %v1998_v1 }
 0x33e   : > { %v1663_v8 = vadd.f32 %v1662_v4, %v1375_v60  ;;  %v1856_v9 = vadd.f32 %v1855_v5, %v1375_v60  ;;  %v1664_v10 = vpop.f32.mrb[77].mxu0  ;;  %v1857_v11 = vpop.f32.mrb[77].mxu1  ;;  %2311 = vst [vmem:[%s3075_s9 + $0x58] sm:$0xff] %v2275_v0  ;;  %v2125_v13 = vmax.f32 %v1659_v58, %v1997_v3 }
 0x33f   : > { %v2244_v12 = vmax.f32 %v2212_v2, %v2122_v61  ;;  %v1665_v14 = vadd.f32 %v1664_v10, %v1375_v60  ;;  %v1858_v15 = vadd.f32 %v1857_v11, %v1375_v60  ;;  %v1666_v17 = vpop.f32.mrb[78].mxu0  ;;  %v1859_v18 = vpop.f32.mrb[78].mxu1  ;;  %v2127_v31 = vmax.f32 %v1852_v63, %v1999_v7 }
 0x340   : > { %v2000_v19 = vmul.f32 0.01, %v1663_v8  ;;  %v2002_v20 = vmul.f32 0.01, %v1856_v9  ;;  %v1667_v21 = vadd.f32 %v1666_v17, %v1380_v59  ;;  %v1668_v22 = vpop.f32.mrb[79].mxu0  ;;  %v1861_v23 = vpop.f32.mrb[79].mxu1  ;;  %v2213_v25 = vmax.f32 %v2124_v62, %v2125_v13 }
 0x341   : > { %v2276_v16 = vmax.f32 %v2244_v12, %v2123_v6  ;;  %v2001_v26 = vmul.f32 0.01, %v1665_v14  ;;  %v2003_v28 = vmul.f32 0.01, %v1858_v15  ;;  %v1860_v30 = vadd.f32 %v1859_v18, %v1380_v59  ;;  %v1400_v11 = vpop.permute.xlu1 %1399  ;;  %v1395_v12 = vpop.permute.xlu0 %1394 }
 0x342   : > { %v2128_v27 = vmax.f32 %v1663_v8, %v2000_v19  ;;  %v2004_v29 = vmul.f32 0.01, %v1667_v21  ;;  %v2245_v32 = vmax.f32 %v2213_v25, %v2126_v24  ;;  %v1669_v34 = vadd.f32 %v1668_v22, %v1380_v59 }
 0x343   : > { %2312 = vst [vmem:[%s3075_s9 + $0x60] sm:$0xff] %v2276_v16  ;;  %v2129_v33 = vmax.f32 %v1665_v14, %v2001_v26  ;;  %v2130_v35 = vmax.f32 %v1856_v9, %v2002_v20  ;;  %v1862_v39 = vadd.f32 %v1861_v23, %v1380_v59  ;;  %v2006_v42 = vmul.f32 0.01, %v1860_v30 }
 0x344   : > { %v2132_v38 = vmax.f32 %v1667_v21, %v2004_v29  ;;  %v2277_v40 = vmax.f32 %v2245_v32, %v2127_v31  ;;  %v2005_v43 = vmul.f32 0.01, %v1669_v34  ;;  %v2131_v46 = vmax.f32 %v1858_v15, %v2003_v28 }
 0x345   : > { %v2214_v41 = vmax.f32 %v2128_v27, %v2129_v33  ;;  %v1672_v44 = vpop.f32.mrb[80].mxu0  ;;  %v1865_v45 = vpop.f32.mrb[80].mxu1  ;;  %v2007_v47 = vmul.f32 0.01, %v1862_v39  ;;  %v2134_v0 = vmax.f32 %v1860_v30, %v2006_v42 }
 0x346   : > { %v1673_v48 = vadd.f32 %v1672_v44, %v1385_v37  ;;  %v1866_v49 = vadd.f32 %v1865_v45, %v1385_v37  ;;  %v1674_v50 = vpop.f32.mrb[81].mxu0  ;;  %v1867_v51 = vpop.f32.mrb[81].mxu1  ;;  %2313 = vst [vmem:[%s3075_s9 + $0x68] sm:$0xff] %v2277_v40  ;;  %v2133_v53 = vmax.f32 %v1669_v34, %v2005_v43 }
 0x347   : > { %v2246_v52 = vmax.f32 %v2214_v41, %v2130_v35  ;;  %v1675_v54 = vadd.f32 %v1674_v50, %v1385_v37  ;;  %v1868_v55 = vadd.f32 %v1867_v51, %v1385_v37  ;;  %v1676_v56 = vpop.f32.mrb[82].mxu0  ;;  %v1869_v57 = vpop.f32.mrb[82].mxu1  ;;  %v2135_v7 = vmax.f32 %v1862_v39, %v2007_v47 }
 0x348   : > { %v2008_v58 = vmul.f32 0.01, %v1673_v48  ;;  %v2010_v59 = vmul.f32 0.01, %v1866_v49  ;;  %v1677_v60 = vadd.f32 %v1676_v56, %v1390_v36  ;;  %v1678_v61 = vpop.f32.mrb[83].mxu0  ;;  %v1871_v62 = vpop.f32.mrb[83].mxu1  ;;  %v2215_v2 = vmax.f32 %v2132_v38, %v2133_v53 }
 0x349   : > { %v2278_v63 = vmax.f32 %v2246_v52, %v2131_v46  ;;  %v2009_v1 = vmul.f32 0.01, %v1675_v54  ;;  %v2011_v4 = vmul.f32 0.01, %v1868_v55  ;;  %v1870_v6 = vadd.f32 %v1869_v57, %v1390_v36  ;;  %v1410_v51 = vpop.permute.xlu1 %1409  ;;  %v1405_v52 = vpop.permute.xlu0 %1404 }
 0x34a   : > { %v2136_v3 = vmax.f32 %v1673_v48, %v2008_v58  ;;  %v2012_v5 = vmul.f32 0.01, %v1677_v60  ;;  %v2247_v8 = vmax.f32 %v2215_v2, %v2134_v0  ;;  %v1679_v10 = vadd.f32 %v1678_v61, %v1390_v36 }
 0x34b   : > { %2314 = vst [vmem:[%s3075_s9 + $0x70] sm:$0xff] %v2278_v63  ;;  %v2137_v9 = vmax.f32 %v1675_v54, %v2009_v1  ;;  %v2138_v13 = vmax.f32 %v1866_v49, %v2010_v59  ;;  %v1872_v15 = vadd.f32 %v1871_v62, %v1390_v36  ;;  %v2014_v19 = vmul.f32 0.01, %v1870_v6 }
 0x34c   : > { %v2140_v14 = vmax.f32 %v1677_v60, %v2012_v5  ;;  %v2279_v17 = vmax.f32 %v2247_v8, %v2135_v7  ;;  %v2013_v20 = vmul.f32 0.01, %v1679_v10  ;;  %v2139_v23 = vmax.f32 %v1868_v55, %v2011_v4 }
 0x34d   : > { %v2216_v18 = vmax.f32 %v2136_v3, %v2137_v9  ;;  %v1682_v21 = vpop.f32.mrb[84].mxu0  ;;  %v1875_v22 = vpop.f32.mrb[84].mxu1  ;;  %v2015_v16 = vmul.f32 0.01, %v1872_v15  ;;  %v2142_v40 = vmax.f32 %v1870_v6, %v2014_v19 }
 0x34e   : > { %v1683_v24 = vadd.f32 %v1682_v21, %v1395_v12  ;;  %v1876_v25 = vadd.f32 %v1875_v22, %v1395_v12  ;;  %v1684_v26 = vpop.f32.mrb[85].mxu0  ;;  %v1877_v27 = vpop.f32.mrb[85].mxu1  ;;  %2315 = vst [vmem:[%s3075_s9 + $0x78] sm:$0xff] %v2279_v17  ;;  %v2141_v29 = vmax.f32 %v1679_v10, %v2013_v20 }
 0x34f   : > { %v2248_v28 = vmax.f32 %v2216_v18, %v2138_v13  ;;  %v1685_v30 = vadd.f32 %v1684_v26, %v1395_v12  ;;  %v1878_v31 = vadd.f32 %v1877_v27, %v1395_v12  ;;  %v1686_v32 = vpop.f32.mrb[86].mxu0  ;;  %v1879_v33 = vpop.f32.mrb[86].mxu1  ;;  %v2143_v47 = vmax.f32 %v1872_v15, %v2015_v16 }
 0x350   : > { %v2016_v34 = vmul.f32 0.01, %v1683_v24  ;;  %v2018_v36 = vmul.f32 0.01, %v1876_v25  ;;  %v1687_v37 = vadd.f32 %v1686_v32, %v1400_v11  ;;  %v1688_v35 = vpop.f32.mrb[87].mxu0  ;;  %v1881_v38 = vpop.f32.mrb[87].mxu1  ;;  %v2217_v41 = vmax.f32 %v2140_v14, %v2141_v29 }
 0x351   : > { %v2280_v39 = vmax.f32 %v2248_v28, %v2139_v23  ;;  %v2017_v42 = vmul.f32 0.01, %v1685_v30  ;;  %v2019_v44 = vmul.f32 0.01, %v1878_v31  ;;  %v1880_v46 = vadd.f32 %v1879_v33, %v1400_v11  ;;  %v1420_v27 = vpop.permute.xlu1 %1419  ;;  %v1415_v28 = vpop.permute.xlu0 %1414 }
 0x352   : > { %v2144_v43 = vmax.f32 %v1683_v24, %v2016_v34  ;;  %v2020_v45 = vmul.f32 0.01, %v1687_v37  ;;  %v2249_v48 = vmax.f32 %v2217_v41, %v2142_v40  ;;  %v1689_v50 = vadd.f32 %v1688_v35, %v1400_v11 }
 0x353   : > { %2316 = vst [vmem:[%s3075_s9 + $0x80] sm:$0xff] %v2280_v39  ;;  %v2145_v49 = vmax.f32 %v1685_v30, %v2017_v42  ;;  %v2146_v53 = vmax.f32 %v1876_v25, %v2018_v36  ;;  %v1882_v55 = vadd.f32 %v1881_v38, %v1400_v11  ;;  %v2022_v58 = vmul.f32 0.01, %v1880_v46 }
 0x354   : > { %v2148_v54 = vmax.f32 %v1687_v37, %v2020_v45  ;;  %v2281_v56 = vmax.f32 %v2249_v48, %v2143_v47  ;;  %v2021_v59 = vmul.f32 0.01, %v1689_v50  ;;  %v2147_v62 = vmax.f32 %v1878_v31, %v2019_v44 }
 0x355   : > { %v2218_v57 = vmax.f32 %v2144_v43, %v2145_v49  ;;  %v1692_v60 = vpop.f32.mrb[88].mxu0  ;;  %v1885_v61 = vpop.f32.mrb[88].mxu1  ;;  %v2023_v63 = vmul.f32 0.01, %v1882_v55  ;;  %v2150_v17 = vmax.f32 %v1880_v46, %v2022_v58 }
 0x356   : > { %v1693_v0 = vadd.f32 %v1692_v60, %v1405_v52  ;;  %v1886_v2 = vadd.f32 %v1885_v61, %v1405_v52  ;;  %v1694_v1 = vpop.f32.mrb[89].mxu0  ;;  %v1887_v3 = vpop.f32.mrb[89].mxu1  ;;  %2317 = vst [vmem:[%s3075_s9 + $0x88] sm:$0xff] %v2281_v56  ;;  %v2149_v5 = vmax.f32 %v1689_v50, %v2021_v59 }
 0x357   : > { %v2250_v4 = vmax.f32 %v2218_v57, %v2146_v53  ;;  %v1695_v6 = vadd.f32 %v1694_v1, %v1405_v52  ;;  %v1888_v7 = vadd.f32 %v1887_v3, %v1405_v52  ;;  %v1696_v8 = vpop.f32.mrb[90].mxu0  ;;  %v1889_v9 = vpop.f32.mrb[90].mxu1  ;;  %v2151_v16 = vmax.f32 %v1882_v55, %v2023_v63 }
 0x358   : > { %v2024_v10 = vmul.f32 0.01, %v1693_v0  ;;  %v2026_v11 = vmul.f32 0.01, %v1886_v2  ;;  %v1697_v12 = vadd.f32 %v1696_v8, %v1410_v51  ;;  %v1698_v13 = vpop.f32.mrb[91].mxu0  ;;  %v1891_v14 = vpop.f32.mrb[91].mxu1  ;;  %v2219_v18 = vmax.f32 %v2148_v54, %v2149_v5 }
 0x359   : > { %v2282_v15 = vmax.f32 %v2250_v4, %v2147_v62  ;;  %v2025_v19 = vmul.f32 0.01, %v1695_v6  ;;  %v2027_v21 = vmul.f32 0.01, %v1888_v7  ;;  %v1890_v23 = vadd.f32 %v1889_v9, %v1410_v51  ;;  %v1430_v3 = vpop.permute.xlu1 %1429  ;;  %v1425_v4 = vpop.permute.xlu0 %1424 }
 0x35a   : > { %v2152_v20 = vmax.f32 %v1693_v0, %v2024_v10  ;;  %v2028_v22 = vmul.f32 0.01, %v1697_v12  ;;  %v2251_v24 = vmax.f32 %v2219_v18, %v2150_v17  ;;  %v1699_v26 = vadd.f32 %v1698_v13, %v1410_v51 }
 0x35b   : > { %2318 = vst [vmem:[%s3075_s9 + $0x90] sm:$0xff] %v2282_v15  ;;  %v2153_v25 = vmax.f32 %v1695_v6, %v2025_v19  ;;  %v2154_v29 = vmax.f32 %v1886_v2, %v2026_v11  ;;  %v1892_v31 = vadd.f32 %v1891_v14, %v1410_v51  ;;  %v2030_v34 = vmul.f32 0.01, %v1890_v23 }
 0x35c   : > { %v2156_v30 = vmax.f32 %v1697_v12, %v2028_v22  ;;  %v2283_v32 = vmax.f32 %v2251_v24, %v2151_v16  ;;  %v2029_v36 = vmul.f32 0.01, %v1699_v26  ;;  %v2155_v38 = vmax.f32 %v1888_v7, %v2027_v21 }
 0x35d   : > { %v2220_v33 = vmax.f32 %v2152_v20, %v2153_v25  ;;  %v1702_v37 = vpop.f32.mrb[92].mxu0  ;;  %v1895_v35 = vpop.f32.mrb[92].mxu1  ;;  %v2031_v39 = vmul.f32 0.01, %v1892_v31  ;;  %v2158_v56 = vmax.f32 %v1890_v23, %v2030_v34 }
 0x35e   : > { %v1703_v40 = vadd.f32 %v1702_v37, %v1415_v28  ;;  %v1896_v41 = vadd.f32 %v1895_v35, %v1415_v28  ;;  %v1704_v42 = vpop.f32.mrb[93].mxu0  ;;  %v1897_v43 = vpop.f32.mrb[93].mxu1  ;;  %2319 = vst [vmem:[%s3075_s9 + $0x98] sm:$0xff] %v2283_v32  ;;  %v2157_v45 = vmax.f32 %v1699_v26, %v2029_v36 }
 0x35f   : > { %v2252_v44 = vmax.f32 %v2220_v33, %v2154_v29  ;;  %v1705_v46 = vadd.f32 %v1704_v42, %v1415_v28  ;;  %v1898_v47 = vadd.f32 %v1897_v43, %v1415_v28  ;;  %v1706_v48 = vpop.f32.mrb[94].mxu0  ;;  %v1899_v49 = vpop.f32.mrb[94].mxu1  ;;  %v2159_v63 = vmax.f32 %v1892_v31, %v2031_v39 }
 0x360   : > { %v2032_v50 = vmul.f32 0.01, %v1703_v40  ;;  %v2034_v51 = vmul.f32 0.01, %v1896_v41  ;;  %v1707_v52 = vadd.f32 %v1706_v48, %v1420_v27  ;;  %v1708_v53 = vpop.f32.mrb[95].mxu0  ;;  %v1901_v54 = vpop.f32.mrb[95].mxu1  ;;  %v2221_v57 = vmax.f32 %v2156_v30, %v2157_v45 }
 0x361   : > { %v2284_v55 = vmax.f32 %v2252_v44, %v2155_v38  ;;  %v2033_v58 = vmul.f32 0.01, %v1705_v46  ;;  %v2035_v60 = vmul.f32 0.01, %v1898_v47  ;;  %v1900_v62 = vadd.f32 %v1899_v49, %v1420_v27  ;;  %v1440_v43 = vpop.permute.xlu1 %1439  ;;  %v1435_v44 = vpop.permute.xlu0 %1434 }
 0x362   : > { %v2160_v59 = vmax.f32 %v1703_v40, %v2032_v50  ;;  %v2036_v61 = vmul.f32 0.01, %v1707_v52  ;;  %v2253_v0 = vmax.f32 %v2221_v57, %v2158_v56  ;;  %v1709_v1 = vadd.f32 %v1708_v53, %v1420_v27 }
 0x363   : > { %2320 = vst [vmem:[%s3075_s9 + $0xa0] sm:$0xff] %v2284_v55  ;;  %v2161_v2 = vmax.f32 %v1705_v46, %v2033_v58  ;;  %v2162_v5 = vmax.f32 %v1896_v41, %v2034_v51  ;;  %v1902_v7 = vadd.f32 %v1901_v54, %v1420_v27  ;;  %v2038_v10 = vmul.f32 0.01, %v1900_v62 }
 0x364   : > { %v2164_v6 = vmax.f32 %v1707_v52, %v2036_v61  ;;  %v2285_v8 = vmax.f32 %v2253_v0, %v2159_v63  ;;  %v2037_v11 = vmul.f32 0.01, %v1709_v1  ;;  %v2163_v14 = vmax.f32 %v1898_v47, %v2035_v60 }
 0x365   : > { %v2222_v9 = vmax.f32 %v2160_v59, %v2161_v2  ;;  %v1712_v12 = vpop.f32.mrb[96].mxu0  ;;  %v1905_v13 = vpop.f32.mrb[96].mxu1  ;;  %v2039_v15 = vmul.f32 0.01, %v1902_v7  ;;  %v2166_v32 = vmax.f32 %v1900_v62, %v2038_v10 }
 0x366   : > { %v1713_v17 = vadd.f32 %v1712_v12, %v1425_v4  ;;  %v1906_v18 = vadd.f32 %v1905_v13, %v1425_v4  ;;  %v1714_v19 = vpop.f32.mrb[97].mxu0  ;;  %v1907_v20 = vpop.f32.mrb[97].mxu1  ;;  %2321 = vst [vmem:[%s3075_s9 + $0xa8] sm:$0xff] %v2285_v8  ;;  %v2165_v22 = vmax.f32 %v1709_v1, %v2037_v11 }
 0x367   : > { %v2254_v21 = vmax.f32 %v2222_v9, %v2162_v5  ;;  %v1715_v23 = vadd.f32 %v1714_v19, %v1425_v4  ;;  %v1908_v16 = vadd.f32 %v1907_v20, %v1425_v4  ;;  %v1716_v24 = vpop.f32.mrb[98].mxu0  ;;  %v1909_v25 = vpop.f32.mrb[98].mxu1  ;;  %v2167_v39 = vmax.f32 %v1902_v7, %v2039_v15 }
 0x368   : > { %v2040_v26 = vmul.f32 0.01, %v1713_v17  ;;  %v2042_v27 = vmul.f32 0.01, %v1906_v18  ;;  %v1717_v28 = vadd.f32 %v1716_v24, %v1430_v3  ;;  %v1718_v29 = vpop.f32.mrb[99].mxu0  ;;  %v1911_v30 = vpop.f32.mrb[99].mxu1  ;;  %v2223_v33 = vmax.f32 %v2164_v6, %v2165_v22 }
 0x369   : > { %v2286_v31 = vmax.f32 %v2254_v21, %v2163_v14  ;;  %v2041_v34 = vmul.f32 0.01, %v1715_v23  ;;  %v2043_v37 = vmul.f32 0.01, %v1908_v16  ;;  %v1910_v38 = vadd.f32 %v1909_v25, %v1430_v3  ;;  %v1450_v20 = vpop.permute.xlu1 %1449  ;;  %v1445_v21 = vpop.permute.xlu0 %1444 }
 0x36a   : > { %v2168_v36 = vmax.f32 %v1713_v17, %v2040_v26  ;;  %v2044_v35 = vmul.f32 0.01, %v1717_v28  ;;  %v2255_v40 = vmax.f32 %v2223_v33, %v2166_v32  ;;  %v1719_v42 = vadd.f32 %v1718_v29, %v1430_v3 }
 0x36b   : > { %2322 = vst [vmem:[%s3075_s9 + $0xb0] sm:$0xff] %v2286_v31  ;;  %v2169_v41 = vmax.f32 %v1715_v23, %v2041_v34  ;;  %v2170_v45 = vmax.f32 %v1906_v18, %v2042_v27  ;;  %v1912_v47 = vadd.f32 %v1911_v30, %v1430_v3  ;;  %v2046_v50 = vmul.f32 0.01, %v1910_v38 }
 0x36c   : > { %v2172_v46 = vmax.f32 %v1717_v28, %v2044_v35  ;;  %v2287_v48 = vmax.f32 %v2255_v40, %v2167_v39  ;;  %v2045_v51 = vmul.f32 0.01, %v1719_v42  ;;  %v2171_v54 = vmax.f32 %v1908_v16, %v2043_v37 }
 0x36d   : > { %v2224_v49 = vmax.f32 %v2168_v36, %v2169_v41  ;;  %v1722_v52 = vpop.f32.mrb[100].mxu0  ;;  %v1915_v53 = vpop.f32.mrb[100].mxu1  ;;  %v2047_v55 = vmul.f32 0.01, %v1912_v47  ;;  %v2174_v8 = vmax.f32 %v1910_v38, %v2046_v50 }
 0x36e   : > { %v1723_v56 = vadd.f32 %v1722_v52, %v1435_v44  ;;  %v1916_v57 = vadd.f32 %v1915_v53, %v1435_v44  ;;  %v1724_v58 = vpop.f32.mrb[101].mxu0  ;;  %v1917_v59 = vpop.f32.mrb[101].mxu1  ;;  %2323 = vst [vmem:[%s3075_s9 + $0xb8] sm:$0xff] %v2287_v48  ;;  %v2173_v61 = vmax.f32 %v1719_v42, %v2045_v51 }
 0x36f   : > { %v2256_v60 = vmax.f32 %v2224_v49, %v2170_v45  ;;  %v1725_v62 = vadd.f32 %v1724_v58, %v1435_v44  ;;  %v1918_v63 = vadd.f32 %v1917_v59, %v1435_v44  ;;  %v1726_v0 = vpop.f32.mrb[102].mxu0  ;;  %v1919_v2 = vpop.f32.mrb[102].mxu1  ;;  %v2175_v15 = vmax.f32 %v1912_v47, %v2047_v55 }
 0x370   : > { %v2048_v1 = vmul.f32 0.01, %v1723_v56  ;;  %v2050_v3 = vmul.f32 0.01, %v1916_v57  ;;  %v1727_v4 = vadd.f32 %v1726_v0, %v1440_v43  ;;  %v1728_v5 = vpop.f32.mrb[103].mxu0  ;;  %v1921_v6 = vpop.f32.mrb[103].mxu1  ;;  %v2225_v9 = vmax.f32 %v2172_v46, %v2173_v61 }
 0x371   : > { %v2288_v7 = vmax.f32 %v2256_v60, %v2171_v54  ;;  %v2049_v10 = vmul.f32 0.01, %v1725_v62  ;;  %v2051_v12 = vmul.f32 0.01, %v1918_v63  ;;  %v1920_v14 = vadd.f32 %v1919_v2, %v1440_v43  ;;  %v1460_v59 = vpop.permute.xlu1 %1459  ;;  %v1455_v60 = vpop.permute.xlu0 %1454 }
 0x372   : > { %v2176_v11 = vmax.f32 %v1723_v56, %v2048_v1  ;;  %v2052_v13 = vmul.f32 0.01, %v1727_v4  ;;  %v2257_v17 = vmax.f32 %v2225_v9, %v2174_v8  ;;  %v1729_v19 = vadd.f32 %v1728_v5, %v1440_v43 }
 0x373   : > { %2324 = vst [vmem:[%s3075_s9 + $0xc0] sm:$0xff] %v2288_v7  ;;  %v2177_v18 = vmax.f32 %v1725_v62, %v2049_v10  ;;  %v2178_v22 = vmax.f32 %v1916_v57, %v2050_v3  ;;  %v1922_v16 = vadd.f32 %v1921_v6, %v1440_v43  ;;  %v2054_v26 = vmul.f32 0.01, %v1920_v14 }
 0x374   : > { %v2180_v23 = vmax.f32 %v1727_v4, %v2052_v13  ;;  %v2289_v24 = vmax.f32 %v2257_v17, %v2175_v15  ;;  %v2053_v27 = vmul.f32 0.01, %v1729_v19  ;;  %v2179_v30 = vmax.f32 %v1918_v63, %v2051_v12 }
 0x375   : > { %v2226_v25 = vmax.f32 %v2176_v11, %v2177_v18  ;;  %v1732_v28 = vpop.f32.mrb[104].mxu0  ;;  %v1925_v29 = vpop.f32.mrb[104].mxu1  ;;  %v2055_v31 = vmul.f32 0.01, %v1922_v16  ;;  %v2182_v48 = vmax.f32 %v1920_v14, %v2054_v26 }
 0x376   : > { %v1733_v32 = vadd.f32 %v1732_v28, %v1445_v21  ;;  %v1926_v33 = vadd.f32 %v1925_v29, %v1445_v21  ;;  %v1734_v34 = vpop.f32.mrb[105].mxu0  ;;  %v1927_v36 = vpop.f32.mrb[105].mxu1  ;;  %2325 = vst [vmem:[%s3075_s9 + $0xc8] sm:$0xff] %v2289_v24  ;;  %v2181_v35 = vmax.f32 %v1729_v19, %v2053_v27 }
 0x377   : > { %v2258_v37 = vmax.f32 %v2226_v25, %v2178_v22  ;;  %v1735_v38 = vadd.f32 %v1734_v34, %v1445_v21  ;;  %v1928_v39 = vadd.f32 %v1927_v36, %v1445_v21  ;;  %v1736_v40 = vpop.f32.mrb[106].mxu0  ;;  %v1929_v41 = vpop.f32.mrb[106].mxu1  ;;  %v2183_v55 = vmax.f32 %v1922_v16, %v2055_v31 }
 0x378   : > { %v2056_v42 = vmul.f32 0.01, %v1733_v32  ;;  %v2058_v43 = vmul.f32 0.01, %v1926_v33  ;;  %v1737_v44 = vadd.f32 %v1736_v40, %v1450_v20  ;;  %v1738_v45 = vpop.f32.mrb[107].mxu0  ;;  %v1931_v46 = vpop.f32.mrb[107].mxu1  ;;  %v2227_v49 = vmax.f32 %v2180_v23, %v2181_v35 }
 0x379   : > { %v2290_v47 = vmax.f32 %v2258_v37, %v2179_v30  ;;  %v2057_v50 = vmul.f32 0.01, %v1735_v38  ;;  %v2059_v52 = vmul.f32 0.01, %v1928_v39  ;;  %v1930_v54 = vadd.f32 %v1929_v41, %v1450_v20 }
 0x37a   : > { %v2184_v51 = vmax.f32 %v1733_v32, %v2056_v42  ;;  %v2060_v53 = vmul.f32 0.01, %v1737_v44  ;;  %v2259_v56 = vmax.f32 %v2227_v49, %v2182_v48  ;;  %v1739_v58 = vadd.f32 %v1738_v45, %v1450_v20 }
 0x37b   : > { %2326 = vst [vmem:[%s3075_s9 + $0xd0] sm:$0xff] %v2290_v47  ;;  %v2185_v57 = vmax.f32 %v1735_v38, %v2057_v50  ;;  %v2186_v61 = vmax.f32 %v1926_v33, %v2058_v43  ;;  %v1932_v63 = vadd.f32 %v1931_v46, %v1450_v20  ;;  %v2062_v1 = vmul.f32 0.01, %v1930_v54 }
 0x37c   : > { %v2188_v62 = vmax.f32 %v1737_v44, %v2060_v53  ;;  %v2291_v0 = vmax.f32 %v2259_v56, %v2183_v55  ;;  %v2061_v3 = vmul.f32 0.01, %v1739_v58  ;;  %v2187_v6 = vmax.f32 %v1928_v39, %v2059_v52 }
 0x37d   : > { %v2228_v2 = vmax.f32 %v2184_v51, %v2185_v57  ;;  %v1742_v4 = vpop.f32.mrb[108].mxu0  ;;  %v1935_v5 = vpop.f32.mrb[108].mxu1  ;;  %v2063_v7 = vmul.f32 0.01, %v1932_v63  ;;  %v2190_v24 = vmax.f32 %v1930_v54, %v2062_v1 }
 0x37e   : > { %v1743_v8 = vadd.f32 %v1742_v4, %v1455_v60  ;;  %v1936_v9 = vadd.f32 %v1935_v5, %v1455_v60  ;;  %v1744_v10 = vpop.f32.mrb[109].mxu0  ;;  %v1937_v11 = vpop.f32.mrb[109].mxu1  ;;  %2327 = vst [vmem:[%s3075_s9 + $0xd8] sm:$0xff] %v2291_v0  ;;  %v2189_v13 = vmax.f32 %v1739_v58, %v2061_v3 }
 0x37f   : > { %v2260_v12 = vmax.f32 %v2228_v2, %v2186_v61  ;;  %v1745_v14 = vadd.f32 %v1744_v10, %v1455_v60  ;;  %v1938_v15 = vadd.f32 %v1937_v11, %v1455_v60  ;;  %v1746_v17 = vpop.f32.mrb[110].mxu0  ;;  %v1939_v18 = vpop.f32.mrb[110].mxu1  ;;  %v2191_v27 = vmax.f32 %v1932_v63, %v2063_v7 }
 0x380   : > { %v2064_v19 = vmul.f32 0.01, %v1743_v8  ;;  %v2066_v20 = vmul.f32 0.01, %v1936_v9  ;;  %v1747_v21 = vadd.f32 %v1746_v17, %v1460_v59  ;;  %v1748_v22 = vpop.f32.mrb[111].mxu0  ;;  %v1941_v23 = vpop.f32.mrb[111].mxu1  ;;  %v2229_v25 = vmax.f32 %v2188_v62, %v2189_v13 }
 0x381   : > { %v2292_v16 = vmax.f32 %v2260_v12, %v2187_v6  ;;  %v2065_v26 = vmul.f32 0.01, %v1745_v14  ;;  %v1940_v30 = vadd.f32 %v1939_v18, %v1460_v59  ;;  %v2067_v33 = vmul.f32 0.01, %v1938_v15 }
 0x382   : > { %v2192_v28 = vmax.f32 %v1743_v8, %v2064_v19  ;;  %v2068_v29 = vmul.f32 0.01, %v1747_v21  ;;  %v2261_v31 = vmax.f32 %v2229_v25, %v2190_v24  ;;  %v1749_v34 = vadd.f32 %v1748_v22, %v1460_v59 }
 0x383   : > { %2328 = vst [vmem:[%s3075_s9 + $0xe0] sm:$0xff] %v2292_v16  ;;  %v2193_v32 = vmax.f32 %v1745_v14, %v2065_v26  ;;  %v2194_v36 = vmax.f32 %v1936_v9, %v2066_v20  ;;  %v1942_v35 = vadd.f32 %v1941_v23, %v1460_v59  ;;  %v2070_v40 = vmul.f32 0.01, %v1940_v30 }
 0x384   : > { %v2196_v37 = vmax.f32 %v1747_v21, %v2068_v29  ;;  %v2293_v38 = vmax.f32 %v2261_v31, %v2191_v27  ;;  %v2069_v41 = vmul.f32 0.01, %v1749_v34  ;;  %v2195_v42 = vmax.f32 %v1938_v15, %v2067_v33 }
 0x385   : > { %v2230_v39 = vmax.f32 %v2192_v28, %v2193_v32  ;;  %v2071_v45 = vmul.f32 0.01, %v1942_v35  ;;  %v2198_v47 = vmax.f32 %v1940_v30, %v2070_v40 }
 0x386   : > { %2329 = vst [vmem:[%s3075_s9 + $0xe8] sm:$0xff] %v2293_v38  ;;  %v2197_v44 = vmax.f32 %v1749_v34, %v2069_v41 }
 0x387   : > { %v2262_v43 = vmax.f32 %v2230_v39, %v2194_v36  ;;  %v2199_v49 = vmax.f32 %v1942_v35, %v2071_v45 }
 0x388   : > { %v2231_v48 = vmax.f32 %v2196_v37, %v2197_v44 }
 0x389   : > { %v2294_v46 = vmax.f32 %v2262_v43, %v2195_v42 }
 0x38a   : > { %v2263_v50 = vmax.f32 %v2231_v48, %v2198_v47 }
 0x38b   : > { %2330 = vst [vmem:[%s3075_s9 + $0xf0] sm:$0xff] %v2294_v46 }
 0x38c   : > { %v2295_v51 = vmax.f32 %v2263_v50, %v2199_v49 }
 0x38e   : > { %2331 = vst [vmem:[%s3075_s9 + $0xf8] sm:$0xff] %v2295_v51 }
 0x38f PF: > { %s17_s26 = sadd.s32 1, %s2669_s26   ;;  %s3126_s24 = smov %s2665_s25 }
 0x390   : > { %p14_p5 = scmp.ge.s32.totalorder %s17_s26, 4   ;;  %s3127_s25 = smov %s3129_s27 }
 0x392   :  { %16 = sbr.rel (!%p14_p5) target bundleno = 2 (0x2), region = 86 }

</bundles_post_ra>
